<compile_context>
chip_gen: v7x
topology: tpu7x:2x2x1
jax: 0.10.0
libtpu: 0.0.40
codegen_flags: <defaults>
</compile_context>

<pallas_src>
import jax
import jax.numpy as jnp
from jax.experimental import pallas as pl
from jax.experimental.pallas import tpu as pltpu


def diabetes_kernel(
    x_ref,
    wf1_ref, bf1_ref, s1_ref,
    wf2_ref, bf2_ref, s2_ref,
    wf3_ref, bf3_ref, s3_ref,
    w4_ref, b4_ref,
    wo_ref, bo_ref,
    out_ref,
):
    x = x_ref[...]

    # Block 1: fused [fc1 | res1] matmul -> (Bt, 64); recombine halves on the VPU.
    n1 = wf1_ref.shape[1] // 2
    y = jnp.dot(x, wf1_ref[...], preferred_element_type=jnp.float32) + bf1_ref[...]
    h = jnp.maximum(y[:, :n1], 0.0) * s1_ref[...] + y[:, n1:]
    # dropout1 = identity at inference

    # Block 2: fused [fc2 | res2] matmul -> (Bt, 128), full lane width.
    n2 = wf2_ref.shape[1] // 2
    y = jnp.dot(h, wf2_ref[...], preferred_element_type=jnp.float32) + bf2_ref[...]
    h = jnp.maximum(y[:, :n2], 0.0) * s2_ref[...] + y[:, n2:]
    # dropout2 = identity at inference

    # Block 3: fused [fc3 | res3] matmul -> (Bt, 64).
    n3 = wf3_ref.shape[1] // 2
    y = jnp.dot(h, wf3_ref[...], preferred_element_type=jnp.float32) + bf3_ref[...]
    h = jnp.maximum(y[:, :n3], 0.0) * s3_ref[...] + y[:, n3:]
    # dropout3 = identity at inference

    # Block 4: fc4 + relu (bn4 scale/shift are folded into the output head).
    h = jnp.maximum(
        jnp.dot(h, w4_ref[...], preferred_element_type=jnp.float32) + b4_ref[...], 0.0
    )

    # Output head: N=1 matmul replaced by VPU multiply + lane reduction.
    out_ref[...] = jnp.sum(h * wo_ref[...], axis=-1, keepdims=True) + bo_ref[...]


def _full_spec(shape):
    # Whole (tiny) parameter array resident in VMEM for every grid step.
    return pl.BlockSpec(shape, lambda i, _s=len(shape): (0,) * _s)


def diabetes_forward(x, folded, *, block_b=256):
    """x: [B, input_size] float32. folded: dict from fold_params()."""
    B, D = x.shape

    # Pick a batch tile: prefer `block_b` (default 256, MXU-row aligned), but make it
    # a divisor of B that is a multiple of 8 (f32 sublane rule); otherwise fall back
    # to the full batch as a single tile (full-dim blocks are always legal).
    bb = min(block_b, B)
    if B % bb:
        bb = max((d for d in range(8, bb + 1, 8) if B % d == 0), default=B)

    ordered = [
        folded["wf1"], folded["bf1"], folded["s1"],
        folded["wf2"], folded["bf2"], folded["s2"],
        folded["wf3"], folded["bf3"], folded["s3"],
        folded["w4"], folded["b4"],
        folded["wo_row"], folded["bo"],
    ]

    in_specs = [pl.BlockSpec((bb, D), lambda i: (i, 0))]
    in_specs += [_full_spec(p.shape) for p in ordered]

    return pl.pallas_call(
        diabetes_kernel,
        out_shape=jax.ShapeDtypeStruct((B, 1), jnp.float32),
        grid_spec=pltpu.PrefetchScalarGridSpec(
            num_scalar_prefetch=0,
            grid=(B // bb,),
            in_specs=in_specs,
            out_specs=pl.BlockSpec((bb, 1), lambda i: (i, 0)),
        ),
        compiler_params=pltpu.CompilerParams(dimension_semantics=("parallel",)),
    )(x, *ordered)


# ----------------------------------------------------------------------------------
# Parameter construction / folding / pure-JAX reference
# ----------------------------------------------------------------------------------

def init_params(key, input_size):
    """Raw parameters matching the PyTorch module (weights stored (in, out))."""
    def linear(k, fan_in, fan_out):
        kw, kb = jax.random.split(k)
        bound = 1.0 / jnp.sqrt(jnp.float32(fan_in))
        w = jax.random.uniform(kw, (fan_in, fan_out), jnp.float32, -bound, bound)
        b = jax.random.uniform(kb, (fan_out,), jnp.float32, -bound, bound)
        return w, b

    def batchnorm(k, n):
        # Non-trivial running stats / affine params so the BN fold is actually exercised.
        k1, k2, k3, k4 = jax.random.split(k, 4)
        return dict(
            gamma=1.0 + 0.1 * jax.random.normal(k1, (n,), jnp.float32),
            beta=0.1 * jax.random.normal(k2, (n,), jnp.float32),
            mean=0.1 * jax.random.normal(k3, (n,), jnp.float32),
            var=1.0 + 0.1 * jax.random.uniform(k4, (n,), jnp.float32),
        )

    keys = jax.random.split(key, 12)
    p = {}
    p["w1"], p["b1"] = linear(keys[0], input_size, 32)
    p["w2"], p["b2"] = linear(keys[1], 32, 64)
    p["w3"], p["b3"] = linear(keys[2], 64, 32)
    p["w4"], p["b4"] = linear(keys[3], 32, 16)
    p["wo"], p["bo"] = linear(keys[4], 16, 1)
    p["wr1"], p["br1"] = linear(keys[5], input_size, 32)
    p["wr2"], p["br2"] = linear(keys[6], 32, 64)
    p["wr3"], p["br3"] = linear(keys[7], 64, 32)
    p["bn1"] = batchnorm(keys[8], 32)
    p["bn2"] = batchnorm(keys[9], 64)
    p["bn3"] = batchnorm(keys[10], 32)
    p["bn4"] = batchnorm(keys[11], 16)
    return p


def fold_params(p, eps=1e-5):
    """Exact inference-time folding + fc/res weight fusion for the kernel."""
    def bn_scale_shift(bn):
        s = bn["gamma"] / jnp.sqrt(bn["var"] + eps)
        t = bn["beta"] - bn["mean"] * s
        return s, t

    s1, t1 = bn_scale_shift(p["bn1"])
    s2, t2 = bn_scale_shift(p["bn2"])
    s3, t3 = bn_scale_shift(p["bn3"])
    s4, t4 = bn_scale_shift(p["bn4"])

    out = {}
    # Blocks 1-3: fuse [W_k | Wr_k] along the output axis; fold t_k into the residual bias.
    out["wf1"] = jnp.concatenate([p["w1"], p["wr1"]], axis=1)
    out["bf1"] = jnp.concatenate([p["b1"], p["br1"] + t1])[None, :]
    out["s1"] = s1[None, :]
    out["wf2"] = jnp.concatenate([p["w2"], p["wr2"]], axis=1)
    out["bf2"] = jnp.concatenate([p["b2"], p["br2"] + t2])[None, :]
    out["s2"] = s2[None, :]
    out["wf3"] = jnp.concatenate([p["w3"], p["wr3"]], axis=1)
    out["bf3"] = jnp.concatenate([p["b3"], p["br3"] + t3])[None, :]
    out["s3"] = s3[None, :]
    # Block 4 + head: out = relu(z4) @ (diag(s4) @ wo) + (t4 @ wo + bo).
    out["w4"] = p["w4"]
    out["b4"] = p["b4"][None, :]
    out["wo_row"] = (s4 * p["wo"][:, 0])[None, :]                      # (1, 16)
    out["bo"] = (p["bo"] + jnp.dot(t4, p["wo"][:, 0]))[None, :]        # (1, 1)
    return out


def reference_forward(x, p, eps=1e-5):
    """Pure-JAX reference with the module's exact (inference) semantics, unfused."""
    def bn(v, b):
        s = b["gamma"] / jnp.sqrt(b["var"] + eps)
        return v * s + (b["beta"] - b["mean"] * s)

    relu = lambda v: jnp.maximum(v, 0.0)

    id1 = x @ p["wr1"] + p["br1"]
    h = bn(relu(x @ p["w1"] + p["b1"]), p["bn1"]) + id1
    id2 = h @ p["wr2"] + p["br2"]
    h = bn(relu(h @ p["w2"] + p["b2"]), p["bn2"]) + id2
    id3 = h @ p["wr3"] + p["br3"]
    h = bn(relu(h @ p["w3"] + p["b3"]), p["bn3"]) + id3
    h = bn(relu(h @ p["w4"] + p["b4"]), p["bn4"])
    return h @ p["wo"] + p["bo"]


if __name__ == "__main__":
    input_size = 8
    batch = 512          # small, but gives 2 grid steps of 256 rows (keeps both v7x TCs busy)

    key = jax.random.PRNGKey(0)
    k_x, k_p = jax.random.split(key)
    x = jax.random.normal(k_x, (batch, input_size), jnp.float32)

    raw_params = init_params(k_p, input_size)
    folded = fold_params(raw_params)

    out = diabetes_forward(x, folded, block_b=256)
    out = jax.block_until_ready(out)

    ref = reference_forward(x, raw_params)
    assert out.shape == (batch, 1)
    assert jnp.allclose(out, ref, atol=1e-4, rtol=1e-4), "mismatch vs JAX reference"

    print("KERNEL_OK")
</pallas_src>

<mosaic_0001>
module attributes {stable_mosaic.version = 11 : i64} {
  func.func @diabetes_kernel(%arg0: i32, %arg1: memref<256x8xf32, #tpu.memory_space<vmem>>, %arg2: memref<8x64xf32, #tpu.memory_space<vmem>>, %arg3: memref<1x64xf32, #tpu.memory_space<vmem>>, %arg4: memref<1x32xf32, #tpu.memory_space<vmem>>, %arg5: memref<32x128xf32, #tpu.memory_space<vmem>>, %arg6: memref<1x128xf32, #tpu.memory_space<vmem>>, %arg7: memref<1x64xf32, #tpu.memory_space<vmem>>, %arg8: memref<64x64xf32, #tpu.memory_space<vmem>>, %arg9: memref<1x64xf32, #tpu.memory_space<vmem>>, %arg10: memref<1x32xf32, #tpu.memory_space<vmem>>, %arg11: memref<32x16xf32, #tpu.memory_space<vmem>>, %arg12: memref<1x16xf32, #tpu.memory_space<vmem>>, %arg13: memref<1x16xf32, #tpu.memory_space<vmem>>, %arg14: memref<1x1xf32, #tpu.memory_space<vmem>>, %arg15: memref<256x1xf32, #tpu.memory_space<vmem>>) attributes {dimension_semantics = [#tpu.dimension_semantics<parallel>], iteration_bounds = array<i64: 2>, scalar_prefetch = 0 : i64, scratch_operands = 0 : i64, tpu.core_type = #tpu.core_type<tc>, window_params = [{transform_indices = @transform_0, window_bounds = array<i64: 256, 8>}, {pipeline_mode = #tpu.pipeline_mode<synchronous>, transform_indices = @transform_1, window_bounds = array<i64: 8, 64>}, {pipeline_mode = #tpu.pipeline_mode<synchronous>, transform_indices = @transform_2, window_bounds = array<i64: 1, 64>}, {pipeline_mode = #tpu.pipeline_mode<synchronous>, transform_indices = @transform_3, window_bounds = array<i64: 1, 32>}, {pipeline_mode = #tpu.pipeline_mode<synchronous>, transform_indices = @transform_4, window_bounds = array<i64: 32, 128>}, {pipeline_mode = #tpu.pipeline_mode<synchronous>, transform_indices = @transform_5, window_bounds = array<i64: 1, 128>}, {pipeline_mode = #tpu.pipeline_mode<synchronous>, transform_indices = @transform_6, window_bounds = array<i64: 1, 64>}, {pipeline_mode = #tpu.pipeline_mode<synchronous>, transform_indices = @transform_7, window_bounds = array<i64: 64, 64>}, {pipeline_mode = #tpu.pipeline_mode<synchronous>, transform_indices = @transform_8, window_bounds = array<i64: 1, 64>}, {pipeline_mode = #tpu.pipeline_mode<synchronous>, transform_indices = @transform_9, window_bounds = array<i64: 1, 32>}, {pipeline_mode = #tpu.pipeline_mode<synchronous>, transform_indices = @transform_10, window_bounds = array<i64: 32, 16>}, {pipeline_mode = #tpu.pipeline_mode<synchronous>, transform_indices = @transform_11, window_bounds = array<i64: 1, 16>}, {pipeline_mode = #tpu.pipeline_mode<synchronous>, transform_indices = @transform_12, window_bounds = array<i64: 1, 16>}, {pipeline_mode = #tpu.pipeline_mode<synchronous>, transform_indices = @transform_13, window_bounds = array<i64: 1, 1>}, {transform_indices = @transform_14, window_bounds = array<i64: 256, 1>}]} {
    %c0 = arith.constant 0 : index
    %c0_0 = arith.constant 0 : index
    %0 = vector.load %arg1[%c0, %c0_0] : memref<256x8xf32, #tpu.memory_space<vmem>>, vector<256x8xf32>
    %c0_1 = arith.constant 0 : index
    %c0_2 = arith.constant 0 : index
    %1 = vector.load %arg2[%c0_1, %c0_2] : memref<8x64xf32, #tpu.memory_space<vmem>>, vector<8x64xf32>
    %cst = arith.constant dense<0.000000e+00> : vector<256x64xf32>
    %2 = tpu.matmul %0, %1, %cst {dimension_numbers = #tpu.dot_dimension_numbers<[1], [0], [0], [1], [0, 0, 1, 1], [], []>} : vector<256x8xf32>, vector<8x64xf32>, vector<256x64xf32> -> vector<256x64xf32>
    %c0_3 = arith.constant 0 : index
    %c0_4 = arith.constant 0 : index
    %3 = vector.load %arg3[%c0_3, %c0_4] : memref<1x64xf32, #tpu.memory_space<vmem>>, vector<1x64xf32>
    %4 = vector.broadcast %3 : vector<1x64xf32> to vector<256x64xf32>
    %5 = arith.addf %2, %4 : vector<256x64xf32>
    %6 = vector.extract_strided_slice %5 {offsets = [0, 0], sizes = [256, 32], strides = [1, 1]} : vector<256x64xf32> to vector<256x32xf32>
    %cst_5 = arith.constant 0.000000e+00 : f32
    %7 = vector.broadcast %cst_5 : f32 to vector<256x32xf32>
    %8 = arith.maximumf %6, %7 : vector<256x32xf32>
    %c0_6 = arith.constant 0 : index
    %c0_7 = arith.constant 0 : index
    %9 = vector.load %arg4[%c0_6, %c0_7] : memref<1x32xf32, #tpu.memory_space<vmem>>, vector<1x32xf32>
    %10 = vector.broadcast %9 : vector<1x32xf32> to vector<256x32xf32>
    %11 = arith.mulf %8, %10 : vector<256x32xf32>
    %12 = vector.extract_strided_slice %5 {offsets = [0, 32], sizes = [256, 32], strides = [1, 1]} : vector<256x64xf32> to vector<256x32xf32>
    %13 = arith.addf %11, %12 : vector<256x32xf32>
    %c0_8 = arith.constant 0 : index
    %c0_9 = arith.constant 0 : index
    %14 = vector.load %arg5[%c0_8, %c0_9] : memref<32x128xf32, #tpu.memory_space<vmem>>, vector<32x128xf32>
    %cst_10 = arith.constant dense<0.000000e+00> : vector<256x128xf32>
    %15 = tpu.matmul %13, %14, %cst_10 {dimension_numbers = #tpu.dot_dimension_numbers<[1], [0], [0], [1], [0, 0, 1, 1], [], []>} : vector<256x32xf32>, vector<32x128xf32>, vector<256x128xf32> -> vector<256x128xf32>
    %c0_11 = arith.constant 0 : index
    %c0_12 = arith.constant 0 : index
    %16 = vector.load %arg6[%c0_11, %c0_12] : memref<1x128xf32, #tpu.memory_space<vmem>>, vector<1x128xf32>
    %17 = vector.broadcast %16 : vector<1x128xf32> to vector<256x128xf32>
    %18 = arith.addf %15, %17 : vector<256x128xf32>
    %19 = vector.extract_strided_slice %18 {offsets = [0, 0], sizes = [256, 64], strides = [1, 1]} : vector<256x128xf32> to vector<256x64xf32>
    %cst_13 = arith.constant 0.000000e+00 : f32
    %20 = vector.broadcast %cst_13 : f32 to vector<256x64xf32>
    %21 = arith.maximumf %19, %20 : vector<256x64xf32>
    %c0_14 = arith.constant 0 : index
    %c0_15 = arith.constant 0 : index
    %22 = vector.load %arg7[%c0_14, %c0_15] : memref<1x64xf32, #tpu.memory_space<vmem>>, vector<1x64xf32>
    %23 = vector.broadcast %22 : vector<1x64xf32> to vector<256x64xf32>
    %24 = arith.mulf %21, %23 : vector<256x64xf32>
    %25 = vector.extract_strided_slice %18 {offsets = [0, 64], sizes = [256, 64], strides = [1, 1]} : vector<256x128xf32> to vector<256x64xf32>
    %26 = arith.addf %24, %25 : vector<256x64xf32>
    %c0_16 = arith.constant 0 : index
    %c0_17 = arith.constant 0 : index
    %27 = vector.load %arg8[%c0_16, %c0_17] : memref<64x64xf32, #tpu.memory_space<vmem>>, vector<64x64xf32>
    %cst_18 = arith.constant dense<0.000000e+00> : vector<256x64xf32>
    %28 = tpu.matmul %26, %27, %cst_18 {dimension_numbers = #tpu.dot_dimension_numbers<[1], [0], [0], [1], [0, 0, 1, 1], [], []>} : vector<256x64xf32>, vector<64x64xf32>, vector<256x64xf32> -> vector<256x64xf32>
    %c0_19 = arith.constant 0 : index
    %c0_20 = arith.constant 0 : index
    %29 = vector.load %arg9[%c0_19, %c0_20] : memref<1x64xf32, #tpu.memory_space<vmem>>, vector<1x64xf32>
    %30 = vector.broadcast %29 : vector<1x64xf32> to vector<256x64xf32>
    %31 = arith.addf %28, %30 : vector<256x64xf32>
    %32 = vector.extract_strided_slice %31 {offsets = [0, 0], sizes = [256, 32], strides = [1, 1]} : vector<256x64xf32> to vector<256x32xf32>
    %cst_21 = arith.constant 0.000000e+00 : f32
    %33 = vector.broadcast %cst_21 : f32 to vector<256x32xf32>
    %34 = arith.maximumf %32, %33 : vector<256x32xf32>
    %c0_22 = arith.constant 0 : index
    %c0_23 = arith.constant 0 : index
    %35 = vector.load %arg10[%c0_22, %c0_23] : memref<1x32xf32, #tpu.memory_space<vmem>>, vector<1x32xf32>
    %36 = vector.broadcast %35 : vector<1x32xf32> to vector<256x32xf32>
    %37 = arith.mulf %34, %36 : vector<256x32xf32>
    %38 = vector.extract_strided_slice %31 {offsets = [0, 32], sizes = [256, 32], strides = [1, 1]} : vector<256x64xf32> to vector<256x32xf32>
    %39 = arith.addf %37, %38 : vector<256x32xf32>
    %c0_24 = arith.constant 0 : index
    %c0_25 = arith.constant 0 : index
    %40 = vector.load %arg11[%c0_24, %c0_25] : memref<32x16xf32, #tpu.memory_space<vmem>>, vector<32x16xf32>
    %cst_26 = arith.constant dense<0.000000e+00> : vector<256x16xf32>
    %41 = tpu.matmul %39, %40, %cst_26 {dimension_numbers = #tpu.dot_dimension_numbers<[1], [0], [0], [1], [0, 0, 1, 1], [], []>} : vector<256x32xf32>, vector<32x16xf32>, vector<256x16xf32> -> vector<256x16xf32>
    %c0_27 = arith.constant 0 : index
    %c0_28 = arith.constant 0 : index
    %42 = vector.load %arg12[%c0_27, %c0_28] : memref<1x16xf32, #tpu.memory_space<vmem>>, vector<1x16xf32>
    %43 = vector.broadcast %42 : vector<1x16xf32> to vector<256x16xf32>
    %44 = arith.addf %41, %43 : vector<256x16xf32>
    %cst_29 = arith.constant 0.000000e+00 : f32
    %45 = vector.broadcast %cst_29 : f32 to vector<256x16xf32>
    %46 = arith.maximumf %44, %45 : vector<256x16xf32>
    %c0_30 = arith.constant 0 : index
    %c0_31 = arith.constant 0 : index
    %47 = vector.load %arg13[%c0_30, %c0_31] : memref<1x16xf32, #tpu.memory_space<vmem>>, vector<1x16xf32>
    %48 = vector.broadcast %47 : vector<1x16xf32> to vector<256x16xf32>
    %49 = arith.mulf %46, %48 : vector<256x16xf32>
    %cst_32 = arith.constant dense<0.000000e+00> : vector<256xf32>
    %50 = vector.multi_reduction <add>, %49, %cst_32 [1] : vector<256x16xf32> to vector<256xf32>
    %51 = vector.shape_cast %50 : vector<256xf32> to vector<256x1xf32>
    %c0_33 = arith.constant 0 : index
    %c0_34 = arith.constant 0 : index
    %52 = vector.load %arg14[%c0_33, %c0_34] : memref<1x1xf32, #tpu.memory_space<vmem>>, vector<1x1xf32>
    %53 = vector.broadcast %52 : vector<1x1xf32> to vector<256x1xf32>
    %54 = arith.addf %51, %53 : vector<256x1xf32>
    %c0_35 = arith.constant 0 : index
    %c0_36 = arith.constant 0 : index
    %55 = vector.load %arg15[%c0_35, %c0_36] : memref<256x1xf32, #tpu.memory_space<vmem>>, vector<256x1xf32>
    tpu.vector_store %arg15[%c0_35, %c0_36], %54 {strides = array<i32>} : memref<256x1xf32, #tpu.memory_space<vmem>>, vector<256x1xf32>,
    return
  }
  func.func @transform_0(%arg0: i32) -> (i32, i32) {
    %c0_i32 = arith.constant 0 : i32
    %c0_i32_0 = arith.constant 0 : i32
    return %arg0, %c0_i32 : i32, i32
  }
  func.func @transform_1(%arg0: i32) -> (i32, i32) {
    %c0_i32 = arith.constant 0 : i32
    %c0_i32_0 = arith.constant 0 : i32
    %c0_i32_1 = arith.constant 0 : i32
    return %c0_i32, %c0_i32_0 : i32, i32
  }
  func.func @transform_2(%arg0: i32) -> (i32, i32) {
    %c0_i32 = arith.constant 0 : i32
    %c0_i32_0 = arith.constant 0 : i32
    %c0_i32_1 = arith.constant 0 : i32
    return %c0_i32, %c0_i32_0 : i32, i32
  }
  func.func @transform_3(%arg0: i32) -> (i32, i32) {
    %c0_i32 = arith.constant 0 : i32
    %c0_i32_0 = arith.constant 0 : i32
    %c0_i32_1 = arith.constant 0 : i32
    return %c0_i32, %c0_i32_0 : i32, i32
  }
  func.func @transform_4(%arg0: i32) -> (i32, i32) {
    %c0_i32 = arith.constant 0 : i32
    %c0_i32_0 = arith.constant 0 : i32
    %c0_i32_1 = arith.constant 0 : i32
    return %c0_i32, %c0_i32_0 : i32, i32
  }
  func.func @transform_5(%arg0: i32) -> (i32, i32) {
    %c0_i32 = arith.constant 0 : i32
    %c0_i32_0 = arith.constant 0 : i32
    %c0_i32_1 = arith.constant 0 : i32
    return %c0_i32, %c0_i32_0 : i32, i32
  }
  func.func @transform_6(%arg0: i32) -> (i32, i32) {
    %c0_i32 = arith.constant 0 : i32
    %c0_i32_0 = arith.constant 0 : i32
    %c0_i32_1 = arith.constant 0 : i32
    return %c0_i32, %c0_i32_0 : i32, i32
  }
  func.func @transform_7(%arg0: i32) -> (i32, i32) {
    %c0_i32 = arith.constant 0 : i32
    %c0_i32_0 = arith.constant 0 : i32
    %c0_i32_1 = arith.constant 0 : i32
    return %c0_i32, %c0_i32_0 : i32, i32
  }
  func.func @transform_8(%arg0: i32) -> (i32, i32) {
    %c0_i32 = arith.constant 0 : i32
    %c0_i32_0 = arith.constant 0 : i32
    %c0_i32_1 = arith.constant 0 : i32
    return %c0_i32, %c0_i32_0 : i32, i32
  }
  func.func @transform_9(%arg0: i32) -> (i32, i32) {
    %c0_i32 = arith.constant 0 : i32
    %c0_i32_0 = arith.constant 0 : i32
    %c0_i32_1 = arith.constant 0 : i32
    return %c0_i32, %c0_i32_0 : i32, i32
  }
  func.func @transform_10(%arg0: i32) -> (i32, i32) {
    %c0_i32 = arith.constant 0 : i32
    %c0_i32_0 = arith.constant 0 : i32
    %c0_i32_1 = arith.constant 0 : i32
    return %c0_i32, %c0_i32_0 : i32, i32
  }
  func.func @transform_11(%arg0: i32) -> (i32, i32) {
    %c0_i32 = arith.constant 0 : i32
    %c0_i32_0 = arith.constant 0 : i32
    %c0_i32_1 = arith.constant 0 : i32
    return %c0_i32, %c0_i32_0 : i32, i32
  }
  func.func @transform_12(%arg0: i32) -> (i32, i32) {
    %c0_i32 = arith.constant 0 : i32
    %c0_i32_0 = arith.constant 0 : i32
    %c0_i32_1 = arith.constant 0 : i32
    return %c0_i32, %c0_i32_0 : i32, i32
  }
  func.func @transform_13(%arg0: i32) -> (i32, i32) {
    %c0_i32 = arith.constant 0 : i32
    %c0_i32_0 = arith.constant 0 : i32
    %c0_i32_1 = arith.constant 0 : i32
    return %c0_i32, %c0_i32_0 : i32, i32
  }
  func.func @transform_14(%arg0: i32) -> (i32, i32) {
    %c0_i32 = arith.constant 0 : i32
    %c0_i32_0 = arith.constant 0 : i32
    return %arg0, %c0_i32 : i32, i32
  }
}

</mosaic_0001>

<bundles_post_ra>
// kernel: tpu_custom_call.1
= control target key start
LH: loop header
LB: loop body
LE: loop exit
PB: predicated region body
PF: predicated region fallthrough
CT: control target
= control target key end

     0   :  { %s3475_s15 = smov 0   ;;  %s4619_s0 = inlined_call_operand.vmem [shape: f32[512,8], index: 0, kind: input, shape index: {}]   ;;  %s4620_s1 = inlined_call_operand.vmem [shape: f32[8,64], index: 1, kind: input, shape index: {}]   ;;  %s4621_s2 = inlined_call_operand.vmem [shape: f32[1,64], index: 2, kind: input, shape index: {}]   ;;  %s4622_s3 = inlined_call_operand.vmem [shape: f32[1,32], index: 3, kind: input, shape index: {}]   ;;  %s4623_s4 = inlined_call_operand.vmem [shape: f32[32,128], index: 4, kind: input, shape index: {}]   ;;  %s4624_s5 = inlined_call_operand.vmem [shape: f32[1,128], index: 5, kind: input, shape index: {}]   ;;  %s4625_s6 = inlined_call_operand.vmem [shape: f32[1,64], index: 6, kind: input, shape index: {}]   ;;  %s4626_s7 = inlined_call_operand.vmem [shape: f32[64,64], index: 7, kind: input, shape index: {}]   ;;  %s4627_s8 = inlined_call_operand.vmem [shape: f32[1,64], index: 8, kind: input, shape index: {}]   ;;  %s4628_s9 = inlined_call_operand.vmem [shape: f32[1,32], index: 9, kind: input, shape index: {}]   ;;  %s4629_s10 = inlined_call_operand.vmem [shape: f32[32,16], index: 10, kind: input, shape index: {}]   ;;  %s4630_s11 = inlined_call_operand.vmem [shape: f32[1,16], index: 11, kind: input, shape index: {}]   ;;  %s4631_s12 = inlined_call_operand.vmem [shape: f32[1,16], index: 12, kind: input, shape index: {}]   ;;  %s4632_s13 = inlined_call_operand.<no memory space> [shape: f32[1,1], index: 13, kind: input, shape index: {}]   ;;  %s4633_s14 = inlined_call_operand.vmem [shape: f32[512,1], index: 14, kind: output, shape index: {}]  }
   0x1   :  { %v19_v0 = vstv %s4632_s13 }
   0x2   :  { %20 = vst [vmem:[#allocation2] sm:$0x1] %v19_v0 }
   0x3 LB: > { %s2826_s16 = sadd.s32 4294967295, %s3393_s15   ;;  %p2830_p0 = scmp.ge.s32.totalorder %s3393_s15, 1  ;;  %s3393_s15 = sphi %s3475_s15, %s26_s15  }
   0x4   : > { %p415_p1 = scmp.lt.s32.totalorder %s3393_s15, 3 }
   0x6   : > { %p416_p2 = pnand %p2830_p0, %p415_p1 }
   0x7   : > { %v505_v1 = vld [vmem:[%s4620_s1] sm:$0xff] (!%p416_p2)  ;;  %s2831_s13 = sshll.u32 (!%p416_p2), %s2826_s16, 5  ;;  %vm513_vm0 = vcmask (!%p416_p2), 64512   ;;  %v1067_v35 = vld [vmem:[%s4623_s4 + $0x8] sm:$0xff] (!%p416_p2)  ;;  %v1068_v37 = vld [vmem:[%s4623_s4 + $0x10] sm:$0xff] (!%p416_p2)  ;;  %s3395_s18 = smov (!%p416_p2), 96  }
   0x8   : > { %419 = sbr.rel (%p416_p2) target bundleno = 1451 (0x5ab), region = 76  ;;  %3119 = vmatprep.subr.mxu0 (!%p416_p2), %v505_v1  ;;  %p462_p3 = scmp.lt.s32.totalorder (!%p416_p2), %s2831_s13, 63  ;;  %v1066_v34 = vld [vmem:[%s4623_s4] sm:$0xff] (!%p416_p2)  ;;  %v1069_v38 = vld [vmem:[%s4623_s4 + $0x18] sm:$0xff] (!%p416_p2)  ;;  %vm1077_vm1 = vcmask (!%p416_p2), 261120   ;;  %vm1645_vm2 = vcmask (!%p416_p2), 523264  }
   0x9   : > { %3120 = vmatpush3.msra.mxu0 (!%p416_p2), %v505_v1  ;;  %v3345_v36 = vpack.c.bf16 (!%p416_p2), %v1067_v35, %v1066_v34  ;;  %v3349_v39 = vpack.c.bf16 (!%p416_p2), %v1069_v38, %v1068_v37  ;;  %v3575_v40 = vld [vmem:[%s4621_s2] ss:$0 sm:$0xff] (!%p416_p2)  ;;  %s3396_s27 = smov (!%p416_p2), 64   ;;  %vm2601_vm3 = vcmask (!%p416_p2), 130048   ;;  %vm2737_vm4 = vcmask (!%p416_p2), 7168  }
   0xb   : > { %3346 = vmatprep.subr.bf16.mxu1 (!%p416_p2), %v3345_v36 }
   0xc   : > { %3348 = vmatpush3.bf16.msra.mxu1 (!%p416_p2), %v3345_v36 }
   0xd   : > { %3350 = vmatprep.subr.bf16.mxu1 (!%p416_p2), %v3349_v39 }
   0xf   : > { %s4635_s13 = smov (!%p462_p3, %s2831_s13), 63 }
  0x10   : > { %s2832_s19 = sshll.u32 %s4635_s13, 3  ;;  %3352 = vmatpush3.bf16.msra.mxu1 %v3349_v39 }
  0x11   : > { %s3494_s22 = scalar_lea.vmem %s4619_s0, %s2832_s19  ;;  %s4518_s21 = scalar_lea.vmem %s4633_s14, %s2832_s19 }
  0x12   : > { %v473_v2 = vld [vmem:[%s3494_s22] sm:$0xff]  ;;  %v474_v3 = vld [vmem:[%s3494_s22 + $0x8] sm:$0xff]  ;;  %v475_v4 = vld [vmem:[%s3494_s22 + $0x10] sm:$0xff] }
  0x13   : > { %3121 = vmatprep.mubr.msk.f32.mxu0 %vm513_vm0, %v473_v2  ;;  %v476_v5 = vld [vmem:[%s3494_s22 + $0x18] sm:$0xff]  ;;  %v477_v6 = vld [vmem:[%s3494_s22 + $0x20] sm:$0xff]  ;;  %v478_v7 = vld [vmem:[%s3494_s22 + $0x28] sm:$0xff] }
  0x14   : > { %3122 = vmatmul.mubr.msk.f32.vlgmr.msra.gmra.mrb[0].mxu0 %vm513_vm0, %v474_v3  ;;  %v479_v8 = vld [vmem:[%s3494_s22 + $0x30] sm:$0xff]  ;;  %v480_v9 = vld [vmem:[%s3494_s22 + $0x38] sm:$0xff]  ;;  %v481_v10 = vld [vmem:[%s3494_s22 + $0x40] sm:$0xff] }
  0x15   : > { %3124 = vmatprep.mubr.msk.f32.mxu0 %vm513_vm0, %v475_v4  ;;  %v482_v11 = vld [vmem:[%s3494_s22 + $0x48] sm:$0xff]  ;;  %v483_v12 = vld [vmem:[%s3494_s22 + $0x50] sm:$0xff]  ;;  %v484_v13 = vld [vmem:[%s3494_s22 + $0x58] sm:$0xff] }
  0x16   : > { %v485_v14 = vld [vmem:[%s3494_s22 + $0x60] sm:$0xff]  ;;  %v486_v15 = vld [vmem:[%s3494_s22 + $0x68] sm:$0xff]  ;;  %v487_v16 = vld [vmem:[%s3494_s22 + $0x70] sm:$0xff] }
  0x17   : > { %v488_v17 = vld [vmem:[%s3494_s22 + $0x78] sm:$0xff]  ;;  %v489_v18 = vld [vmem:[%s3494_s22 + $0x80] sm:$0xff]  ;;  %v490_v19 = vld [vmem:[%s3494_s22 + $0x88] sm:$0xff] }
  0x18   : > { %3125 = vmatmul.mubr.msk.f32.gmra.mrb[2].mxu0 %vm513_vm0, %v476_v5  ;;  %v491_v20 = vld [vmem:[%s3494_s22 + $0x90] sm:$0xff]  ;;  %v492_v21 = vld [vmem:[%s3494_s22 + $0x98] sm:$0xff]  ;;  %v493_v22 = vld [vmem:[%s3494_s22 + $0xa0] sm:$0xff] }
  0x19   : > { %3127 = vmatprep.mubr.msk.f32.mxu0 %vm513_vm0, %v477_v6  ;;  %v494_v23 = vld [vmem:[%s3494_s22 + $0xa8] sm:$0xff]  ;;  %v495_v24 = vld [vmem:[%s3494_s22 + $0xb0] sm:$0xff]  ;;  %v496_v25 = vld [vmem:[%s3494_s22 + $0xb8] sm:$0xff] }
  0x1a   : > { %v497_v26 = vld [vmem:[%s3494_s22 + $0xc0] sm:$0xff]  ;;  %v498_v27 = vld [vmem:[%s3494_s22 + $0xc8] sm:$0xff]  ;;  %v499_v28 = vld [vmem:[%s3494_s22 + $0xd0] sm:$0xff] }
  0x1b   : > { %v500_v29 = vld [vmem:[%s3494_s22 + $0xd8] sm:$0xff]  ;;  %v501_v30 = vld [vmem:[%s3494_s22 + $0xe0] sm:$0xff]  ;;  %v502_v31 = vld [vmem:[%s3494_s22 + $0xe8] sm:$0xff] }
  0x1c   : > { %3128 = vmatmul.mubr.msk.f32.gmra.mrb[4].mxu0 %vm513_vm0, %v478_v7  ;;  %v503_v32 = vld [vmem:[%s3494_s22 + $0xf0] sm:$0xff]  ;;  %v504_v33 = vld [vmem:[%s3494_s22 + $0xf8] sm:$0xff] }
  0x1d   : > { %3130 = vmatprep.mubr.msk.f32.mxu0 %vm513_vm0, %v479_v8 }
  0x20   : > { %3131 = vmatmul.mubr.msk.f32.gmra.mrb[6].mxu0 %vm513_vm0, %v480_v9 }
  0x21   : > { %3133 = vmatprep.mubr.msk.f32.mxu0 %vm513_vm0, %v481_v10 }
  0x24   : > { %3134 = vmatmul.mubr.msk.f32.gmra.mrb[8].mxu0 %vm513_vm0, %v482_v11 }
  0x25   : > { %3136 = vmatprep.mubr.msk.f32.mxu0 %vm513_vm0, %v483_v12 }
  0x28   : > { %3137 = vmatmul.mubr.msk.f32.gmra.mrb[10].mxu0 %vm513_vm0, %v484_v13 }
  0x29   : > { %3139 = vmatprep.mubr.msk.f32.mxu0 %vm513_vm0, %v485_v14 }
  0x2c   : > { %3140 = vmatmul.mubr.msk.f32.gmra.mrb[12].mxu0 %vm513_vm0, %v486_v15 }
  0x2d   : > { %3142 = vmatprep.mubr.msk.f32.mxu0 %vm513_vm0, %v487_v16 }
  0x30   : > { %3143 = vmatmul.mubr.msk.f32.gmra.mrb[14].mxu0 %vm513_vm0, %v488_v17 }
  0x31   : > { %3145 = vmatprep.mubr.msk.f32.mxu0 %vm513_vm0, %v489_v18 }
  0x34   : > { %3146 = vmatmul.mubr.msk.f32.gmra.mrb[16].mxu0 %vm513_vm0, %v490_v19 }
  0x35   : > { %3148 = vmatprep.mubr.msk.f32.mxu0 %vm513_vm0, %v491_v20 }
  0x38   : > { %3149 = vmatmul.mubr.msk.f32.gmra.mrb[18].mxu0 %vm513_vm0, %v492_v21 }
  0x39   : > { %3151 = vmatprep.mubr.msk.f32.mxu0 %vm513_vm0, %v493_v22 }
  0x3c   : > { %3152 = vmatmul.mubr.msk.f32.gmra.mrb[20].mxu0 %vm513_vm0, %v494_v23 }
  0x3d   : > { %3154 = vmatprep.mubr.msk.f32.mxu0 %vm513_vm0, %v495_v24 }
  0x40   : > { %3155 = vmatmul.mubr.msk.f32.gmra.mrb[22].mxu0 %vm513_vm0, %v496_v25 }
  0x41   : > { %3157 = vmatprep.mubr.msk.f32.mxu0 %vm513_vm0, %v497_v26 }
  0x44   : > { %3158 = vmatmul.mubr.msk.f32.gmra.mrb[24].mxu0 %vm513_vm0, %v498_v27 }
  0x45   : > { %3160 = vmatprep.mubr.msk.f32.mxu0 %vm513_vm0, %v499_v28 }
  0x48   : > { %3161 = vmatmul.mubr.msk.f32.gmra.mrb[26].mxu0 %vm513_vm0, %v500_v29 }
  0x49   : > { %3163 = vmatprep.mubr.msk.f32.mxu0 %vm513_vm0, %v501_v30 }
  0x4c   : > { %3164 = vmatmul.mubr.msk.f32.gmra.mrb[28].mxu0 %vm513_vm0, %v502_v31 }
  0x4d   : > { %3166 = vmatprep.mubr.msk.f32.mxu0 %vm513_vm0, %v503_v32 }
  0x50   : > { %3167 = vmatmul.mubr.msk.f32.gmra.mrb[30].mxu0 %vm513_vm0, %v504_v33 }
  0xe7   : > { %v3123_v41 = vpop.f32.mrb[0].mxu0 }
  0xe8   : > { %v676_v42 = vpop.f32.mrb[1].mxu0  ;;  %v3583_v46 = vadd.f32 %v3123_v41, %v3575_v40 }
  0xe9   : > { %v3578_v43 = vadd.f32 %v3575_v40, %v676_v42 }
  0xeb   : > { %v3126_v44 = vpop.f32.mrb[2].mxu0  ;;  %938 = vrot.lane.b32.xlu0 %v3578_v43, %s3395_s18 }
  0xec   : > { %v686_v45 = vpop.f32.mrb[3].mxu0  ;;  %v3593_v50 = vadd.f32 %v3126_v44, %v3575_v40  ;;  %v3736_v44 = vld [vmem:[%s4622_s3] ss:$0 sm:$0xff] }
  0xed   : > { %v3586_v47 = vadd.f32 %v3575_v40, %v686_v45 }
  0xef   : > { %v3129_v48 = vpop.f32.mrb[4].mxu0  ;;  %942 = vrot.lane.b32.xlu1 %v3586_v47, %s3395_s18  ;;  %940 = vrot.lane.b32.xlu0 %v3583_v46, %s3395_s18 }
  0xf0   : > { %v696_v49 = vpop.f32.mrb[5].mxu0  ;;  %v3599_v52 = vadd.f32 %v3129_v48, %v3575_v40  ;;  %v836_v48 = vmax.f32 %v3583_v46, 0.0 }
  0xf1   : > { %v3596_v51 = vadd.f32 %v3575_v40, %v696_v49  ;;  %v837_v49 = vmax.f32 %v3586_v47, 0.0 }
  0xf2   : > { %v840_v47 = vmax.f32 %v3599_v52, 0.0 }
  0xf3   : > { %v3132_v53 = vpop.f32.mrb[6].mxu0  ;;  %944 = vrot.lane.b32.xlu1 %v3593_v50, %s3395_s18  ;;  %946 = vrot.lane.b32.xlu0 %v3596_v51, %s3395_s18 }
  0xf4   : > { %v706_v54 = vpop.f32.mrb[7].mxu0  ;;  %v3609_v56 = vadd.f32 %v3132_v53, %v3575_v40 }
  0xf5   : > { %v3606_v55 = vadd.f32 %v3575_v40, %v706_v54 }
  0xf7   : > { %v3135_v57 = vpop.f32.mrb[8].mxu0  ;;  %948 = vrot.lane.b32.xlu1 %v3599_v52, %s3395_s18  ;;  %950 = vrot.lane.b32.xlu0 %v3606_v55, %s3395_s18  ;;  %v879_v52 = vmul.f32 %v3736_v44, %v840_v47 }
  0xf8   : > { %v716_v58 = vpop.f32.mrb[9].mxu0  ;;  %v3619_v60 = vadd.f32 %v3135_v57, %v3575_v40 }
  0xf9   : > { %v3616_v59 = vadd.f32 %v3575_v40, %v716_v58  ;;  %v838_v58 = vmax.f32 %v3593_v50, 0.0 }
  0xfb   : > { %v3138_v61 = vpop.f32.mrb[10].mxu0  ;;  %952 = vrot.lane.b32.xlu1 %v3609_v56, %s3395_s18  ;;  %954 = vrot.lane.b32.xlu0 %v3616_v59, %s3395_s18  ;;  %v877_v50 = vmul.f32 %v3736_v44, %v838_v58 }
  0xfc   : > { %v726_v62 = vpop.f32.mrb[11].mxu0  ;;  %v3629_v0 = vadd.f32 %v3138_v61, %v3575_v40  ;;  %v839_v61 = vmax.f32 %v3596_v51, 0.0 }
  0xfd   : > { %v3626_v63 = vadd.f32 %v3575_v40, %v726_v62  ;;  %v876_v62 = vmul.f32 %v3736_v44, %v837_v49 }
  0xfe   : > { %v878_v51 = vmul.f32 %v3736_v44, %v839_v61 }
  0xff   : > { %v3141_v1 = vpop.f32.mrb[12].mxu0  ;;  %956 = vrot.lane.b32.xlu1 %v3619_v60, %s3395_s18  ;;  %958 = vrot.lane.b32.xlu0 %v3626_v63, %s3395_s18 }
 0x100   : > { %v736_v2 = vpop.f32.mrb[13].mxu0  ;;  %v3639_v4 = vadd.f32 %v3141_v1, %v3575_v40  ;;  %v875_v1 = vmul.f32 %v3736_v44, %v836_v48 }
 0x101   : > { %v3636_v3 = vadd.f32 %v3575_v40, %v736_v2 }
 0x103   : > { %v3144_v5 = vpop.f32.mrb[14].mxu0  ;;  %960 = vrot.lane.b32.xlu1 %v3629_v0, %s3395_s18  ;;  %962 = vrot.lane.b32.xlu0 %v3636_v3, %s3395_s18 }
 0x104   : > { %v746_v6 = vpop.f32.mrb[15].mxu0  ;;  %v3649_v8 = vadd.f32 %v3144_v5, %v3575_v40 }
 0x105   : > { %v3646_v7 = vadd.f32 %v3575_v40, %v746_v6  ;;  %v841_v6 = vmax.f32 %v3606_v55, 0.0 }
 0x107   : > { %v3147_v9 = vpop.f32.mrb[16].mxu0  ;;  %964 = vrot.lane.b32.xlu1 %v3639_v4, %s3395_s18  ;;  %966 = vrot.lane.b32.xlu0 %v3646_v7, %s3395_s18  ;;  %v880_v55 = vmul.f32 %v3736_v44, %v841_v6 }
 0x108   : > { %v756_v10 = vpop.f32.mrb[17].mxu0  ;;  %v3659_v12 = vadd.f32 %v3147_v9, %v3575_v40 }
 0x109   : > { %v3656_v11 = vadd.f32 %v3575_v40, %v756_v10 }
 0x10b   : > { %v3150_v13 = vpop.f32.mrb[18].mxu0  ;;  %968 = vrot.lane.b32.xlu1 %v3649_v8, %s3395_s18  ;;  %970 = vrot.lane.b32.xlu0 %v3656_v11, %s3395_s18 }
 0x10c   : > { %v766_v14 = vpop.f32.mrb[19].mxu0  ;;  %v3669_v16 = vadd.f32 %v3150_v13, %v3575_v40 }
 0x10d   : > { %v3666_v15 = vadd.f32 %v3575_v40, %v766_v14 }
 0x10f   : > { %v3153_v17 = vpop.f32.mrb[20].mxu0  ;;  %972 = vrot.lane.b32.xlu1 %v3659_v12, %s3395_s18  ;;  %974 = vrot.lane.b32.xlu0 %v3666_v15, %s3395_s18 }
 0x110   : > { %v776_v18 = vpop.f32.mrb[21].mxu0  ;;  %v3679_v20 = vadd.f32 %v3153_v17, %v3575_v40  ;;  %v842_v17 = vmax.f32 %v3609_v56, 0.0 }
 0x111   : > { %v3676_v19 = vadd.f32 %v3575_v40, %v776_v18  ;;  %v843_v18 = vmax.f32 %v3616_v59, 0.0 }
 0x112   : > { %v881_v56 = vmul.f32 %v3736_v44, %v842_v17  ;;  %v854_v17 = vmax.f32 %v3669_v16, 0.0 }
 0x113   : > { %v3156_v21 = vpop.f32.mrb[22].mxu0  ;;  %976 = vrot.lane.b32.xlu1 %v3669_v16, %s3395_s18  ;;  %978 = vrot.lane.b32.xlu0 %v3676_v19, %s3395_s18  ;;  %v882_v59 = vmul.f32 %v3736_v44, %v843_v18  ;;  %v855_v18 = vmax.f32 %v3676_v19, 0.0 }
 0x114   : > { %v786_v22 = vpop.f32.mrb[23].mxu0  ;;  %v3689_v24 = vadd.f32 %v3156_v21, %v3575_v40  ;;  %v893_v16 = vmul.f32 %v3736_v44, %v854_v17 }
 0x115   : > { %v3686_v23 = vadd.f32 %v3575_v40, %v786_v22  ;;  %v894_v19 = vmul.f32 %v3736_v44, %v855_v18  ;;  %v1636_v18 = vld [vmem:[%s4626_s7 + $0x30] sm:$0xff] }
 0x117   : > { %v3159_v25 = vpop.f32.mrb[24].mxu0  ;;  %980 = vrot.lane.b32.xlu1 %v3679_v20, %s3395_s18  ;;  %982 = vrot.lane.b32.xlu0 %v3686_v23, %s3395_s18 }
 0x118   : > { %v796_v26 = vpop.f32.mrb[25].mxu0  ;;  %v3699_v28 = vadd.f32 %v3159_v25, %v3575_v40 }
 0x119   : > { %v3696_v27 = vadd.f32 %v3575_v40, %v796_v26 }
 0x11b   : > { %v3162_v29 = vpop.f32.mrb[26].mxu0  ;;  %984 = vrot.lane.b32.xlu1 %v3689_v24, %s3395_s18  ;;  %986 = vrot.lane.b32.xlu0 %v3696_v27, %s3395_s18 }
 0x11c   : > { %v806_v30 = vpop.f32.mrb[27].mxu0  ;;  %v3709_v32 = vadd.f32 %v3162_v29, %v3575_v40  ;;  %v844_v29 = vmax.f32 %v3619_v60, 0.0 }
 0x11d   : > { %v3706_v31 = vadd.f32 %v3575_v40, %v806_v30  ;;  %v845_v30 = vmax.f32 %v3626_v63, 0.0 }
 0x11e   : > { %v883_v60 = vmul.f32 %v3736_v44, %v844_v29 }
 0x11f   : > { %v3165_v33 = vpop.f32.mrb[28].mxu0  ;;  %988 = vrot.lane.b32.xlu1 %v3699_v28, %s3395_s18  ;;  %990 = vrot.lane.b32.xlu0 %v3706_v31, %s3395_s18  ;;  %v884_v63 = vmul.f32 %v3736_v44, %v845_v30 }
 0x120   : > { %v816_v34 = vpop.f32.mrb[29].mxu0  ;;  %v3719_v36 = vadd.f32 %v3165_v33, %v3575_v40 }
 0x121   : > { %v3716_v35 = vadd.f32 %v3575_v40, %v816_v34 }
 0x123   : > { %v3168_v37 = vpop.f32.mrb[30].mxu0  ;;  %992 = vrot.lane.b32.xlu1 %v3709_v32, %s3395_s18  ;;  %994 = vrot.lane.b32.xlu0 %v3716_v35, %s3395_s18 }
 0x124   : > { %v832_v38 = vadd.f32 %v3168_v37, %v3575_v40  ;;  %v826_v39 = vpop.f32.mrb[31].mxu0 }
 0x125   : > { %v3727_v41 = vadd.f32 %v3575_v40, %v826_v39  ;;  %v835_v40 = vmax.f32 %v3578_v43, 0.0  ;;  %v846_v39 = vmax.f32 %v3629_v0, 0.0 }
 0x126   : > { %v866_v42 = vmax.f32 %v832_v38, 0.0 }
 0x127   : > { %996 = vrot.lane.b32.xlu1 %v3719_v36, %s3395_s18  ;;  %998 = vrot.lane.b32.xlu0 %v3727_v41, %s3395_s18  ;;  %v874_v53 = vmul.f32 %v3736_v44, %v835_v40  ;;  %v885_v0 = vmul.f32 %v3736_v44, %v846_v39 }
 0x128   : > { %v3739_v45 = vmul.f32 %v3736_v44, %v866_v42  ;;  %v847_v42 = vmax.f32 %v3636_v3, 0.0 }
 0x12a   : > { %v886_v3 = vmul.f32 %v3736_v44, %v847_v42 }
 0x12b   : > { %1000 = vrot.lane.b32.xlu1 %v832_v38, %s3395_s18 }
 0x15d   : > { %v939_v54 = vpop.permute.xlu0 %938 }
 0x15e   : > { %v1034_v57 = vadd.f32 %v939_v54, %v874_v53  ;;  %v848_v54 = vmax.f32 %v3639_v4, 0.0 }
 0x160   : > { %3177 = vmatprep.mubr.msk.f32.mxu1 %vm1077_vm1, %v1034_v57  ;;  %v849_v57 = vmax.f32 %v3646_v7, 0.0  ;;  %v887_v4 = vmul.f32 %v3736_v44, %v848_v54  ;;  %v862_v54 = vmax.f32 %v3709_v32, 0.0 }
 0x161   : > { %v943_v43 = vpop.permute.xlu1 %942  ;;  %v941_v2 = vpop.permute.xlu0 %940 }
 0x162   : > { %v1036_v46 = vadd.f32 %v943_v43, %v876_v62  ;;  %v1035_v5 = vadd.f32 %v941_v2, %v875_v1  ;;  %v850_v43 = vmax.f32 %v3649_v8, 0.0  ;;  %v851_v2 = vmax.f32 %v3656_v11, 0.0 }
 0x163   : > { %v888_v7 = vmul.f32 %v3736_v44, %v849_v57  ;;  %v863_v57 = vmax.f32 %v3716_v35, 0.0  ;;  %v901_v32 = vmul.f32 %v3736_v44, %v862_v54 }
 0x164   : > { %3178 = vmatmul.mubr.msk.f32.vlgmr.msra.gmra.mrb[0].mxu1 %vm1077_vm1, %v1035_v5  ;;  %v889_v8 = vmul.f32 %v3736_v44, %v850_v43  ;;  %v890_v11 = vmul.f32 %v3736_v44, %v851_v2 }
 0x165   : > { %v945_v9 = vpop.permute.xlu1 %944  ;;  %v947_v10 = vpop.permute.xlu0 %946  ;;  %3180 = vmatprep.mubr.msk.f32.mxu1 %vm1077_vm1, %v1036_v46  ;;  %v902_v35 = vmul.f32 %v3736_v44, %v863_v57 }
 0x166   : > { %v1037_v13 = vadd.f32 %v945_v9, %v877_v50  ;;  %v1038_v14 = vadd.f32 %v947_v10, %v878_v51  ;;  %v852_v50 = vmax.f32 %v3659_v12, 0.0  ;;  %v853_v51 = vmax.f32 %v3666_v15, 0.0 }
 0x168   : > { %3181 = vmatmul.mubr.msk.f32.gmra.mrb[2].mxu1 %vm1077_vm1, %v1037_v13  ;;  %v891_v12 = vmul.f32 %v3736_v44, %v852_v50  ;;  %v892_v15 = vmul.f32 %v3736_v44, %v853_v51 }
 0x169   : > { %v949_v21 = vpop.permute.xlu1 %948  ;;  %v951_v22 = vpop.permute.xlu0 %950  ;;  %3183 = vmatprep.mubr.msk.f32.mxu1 %vm1077_vm1, %v1038_v14 }
 0x16a   : > { %v1039_v25 = vadd.f32 %v949_v21, %v879_v52  ;;  %v1040_v26 = vadd.f32 %v951_v22, %v880_v55 }
 0x16c   : > { %3184 = vmatmul.mubr.msk.f32.gmra.mrb[4].mxu1 %vm1077_vm1, %v1039_v25  ;;  %v856_v25 = vmax.f32 %v3679_v20, 0.0 }
 0x16d   : > { %v953_v33 = vpop.permute.xlu1 %952  ;;  %v955_v34 = vpop.permute.xlu0 %954  ;;  %3186 = vmatprep.mubr.msk.f32.mxu1 %vm1077_vm1, %v1040_v26  ;;  %v857_v26 = vmax.f32 %v3686_v23, 0.0 }
 0x16e   : > { %v1041_v37 = vadd.f32 %v953_v33, %v881_v56  ;;  %v1042_v38 = vadd.f32 %v955_v34, %v882_v59  ;;  %v858_v33 = vmax.f32 %v3689_v24, 0.0  ;;  %v859_v34 = vmax.f32 %v3696_v27, 0.0 }
 0x16f   : > { %v895_v20 = vmul.f32 %v3736_v44, %v856_v25  ;;  %v896_v23 = vmul.f32 %v3736_v44, %v857_v26 }
 0x170   : > { %3187 = vmatmul.mubr.msk.f32.gmra.mrb[6].mxu1 %vm1077_vm1, %v1041_v37  ;;  %v897_v24 = vmul.f32 %v3736_v44, %v858_v33  ;;  %v898_v27 = vmul.f32 %v3736_v44, %v859_v34 }
 0x171   : > { %v957_v40 = vpop.permute.xlu1 %956  ;;  %v959_v48 = vpop.permute.xlu0 %958  ;;  %3189 = vmatprep.mubr.msk.f32.mxu1 %vm1077_vm1, %v1042_v38 }
 0x172   : > { %v1043_v49 = vadd.f32 %v957_v40, %v883_v60  ;;  %v1044_v53 = vadd.f32 %v959_v48, %v884_v63  ;;  %v860_v60 = vmax.f32 %v3699_v28, 0.0  ;;  %v861_v63 = vmax.f32 %v3706_v31, 0.0 }
 0x174   : > { %3190 = vmatmul.mubr.msk.f32.gmra.mrb[8].mxu1 %vm1077_vm1, %v1043_v49  ;;  %v899_v28 = vmul.f32 %v3736_v44, %v860_v60  ;;  %v900_v31 = vmul.f32 %v3736_v44, %v861_v63 }
 0x175   : > { %v961_v58 = vpop.permute.xlu1 %960  ;;  %v963_v61 = vpop.permute.xlu0 %962  ;;  %3192 = vmatprep.mubr.msk.f32.mxu1 %vm1077_vm1, %v1044_v53 }
 0x176   : > { %v1045_v62 = vadd.f32 %v961_v58, %v885_v0  ;;  %v1046_v1 = vadd.f32 %v963_v61, %v886_v3 }
 0x178   : > { %3193 = vmatmul.mubr.msk.f32.gmra.mrb[10].mxu1 %vm1077_vm1, %v1045_v62  ;;  %v864_v62 = vmax.f32 %v3719_v36, 0.0 }
 0x179   : > { %v965_v46 = vpop.permute.xlu1 %964  ;;  %v967_v5 = vpop.permute.xlu0 %966  ;;  %3195 = vmatprep.mubr.msk.f32.mxu1 %vm1077_vm1, %v1046_v1  ;;  %v865_v1 = vmax.f32 %v3727_v41, 0.0 }
 0x17a   : > { %v1047_v47 = vadd.f32 %v965_v46, %v887_v4  ;;  %v1048_v6 = vadd.f32 %v967_v5, %v888_v7  ;;  %v903_v46 = vmul.f32 %v3736_v44, %v864_v62 }
 0x17b   : > { %v904_v36 = vmul.f32 %v3736_v44, %v865_v1  ;;  %v1631_v44 = vld [vmem:[%s4626_s7 + $0x8] sm:$0xff] }
 0x17c   : > { %3196 = vmatmul.mubr.msk.f32.gmra.mrb[12].mxu1 %vm1077_vm1, %v1047_v47 }
 0x17d   : > { %v969_v9 = vpop.permute.xlu1 %968  ;;  %v971_v10 = vpop.permute.xlu0 %970  ;;  %3198 = vmatprep.mubr.msk.f32.mxu1 %vm1077_vm1, %v1048_v6 }
 0x17e   : > { %v1049_v13 = vadd.f32 %v969_v9, %v889_v8  ;;  %v1050_v14 = vadd.f32 %v971_v10, %v890_v11  ;;  %v1630_v8 = vld [vmem:[%s4626_s7] sm:$0xff]  ;;  %v1632_v9 = vld [vmem:[%s4626_s7 + $0x10] sm:$0xff] }
 0x17f   : > { %v3353_v11 = vpack.c.bf16 %v1631_v44, %v1630_v8  ;;  %v1634_v10 = vld [vmem:[%s4626_s7 + $0x20] sm:$0xff] }
 0x180   : > { %3199 = vmatmul.mubr.msk.f32.gmra.mrb[14].mxu1 %vm1077_vm1, %v1049_v13 }
 0x181   : > { %v973_v52 = vpop.permute.xlu1 %972  ;;  %v975_v55 = vpop.permute.xlu0 %974  ;;  %3201 = vmatprep.mubr.msk.f32.mxu1 %vm1077_vm1, %v1050_v14  ;;  %3354 = vmatprep.subr.bf16.mxu0 %v3353_v11  ;;  %v1635_v14 = vld [vmem:[%s4626_s7 + $0x28] sm:$0xff] }
 0x182   : > { %v1051_v21 = vadd.f32 %v973_v52, %v891_v12  ;;  %v1052_v22 = vadd.f32 %v975_v55, %v892_v15  ;;  %3356 = vmatpush3.bf16.msra.mxu0 %v3353_v11  ;;  %v3361_v17 = vpack.c.bf16 %v1635_v14, %v1634_v10  ;;  %v1637_v12 = vld [vmem:[%s4626_s7 + $0x38] sm:$0xff]  ;;  %v3864_v52 = vld [vmem:[%s4624_s5] ss:$0 sm:$0xff] }
 0x183   : > { %v3365_v15 = vpack.c.bf16 %v1637_v12, %v1636_v18 }
 0x184   : > { %3202 = vmatmul.mubr.msk.f32.gmra.mrb[16].mxu1 %vm1077_vm1, %v1051_v21 }
 0x185   : > { %v977_v29 = vpop.permute.xlu1 %976  ;;  %v979_v30 = vpop.permute.xlu0 %978  ;;  %3204 = vmatprep.mubr.msk.f32.mxu1 %vm1077_vm1, %v1052_v22 }
 0x186   : > { %v1053_v56 = vadd.f32 %v977_v29, %v893_v16  ;;  %v1054_v59 = vadd.f32 %v979_v30, %v894_v19 }
 0x188   : > { %3205 = vmatmul.mubr.msk.f32.gmra.mrb[18].mxu1 %vm1077_vm1, %v1053_v56 }
 0x189   : > { %v981_v37 = vpop.permute.xlu1 %980  ;;  %v983_v38 = vpop.permute.xlu0 %982  ;;  %3207 = vmatprep.mubr.msk.f32.mxu1 %vm1077_vm1, %v1054_v59 }
 0x18a   : > { %v1055_v39 = vadd.f32 %v981_v37, %v895_v20  ;;  %v1056_v42 = vadd.f32 %v983_v38, %v896_v23 }
 0x18c   : > { %3208 = vmatmul.mubr.msk.f32.gmra.mrb[20].mxu1 %vm1077_vm1, %v1055_v39 }
 0x18d   : > { %v985_v40 = vpop.permute.xlu1 %984  ;;  %v987_v48 = vpop.permute.xlu0 %986  ;;  %3210 = vmatprep.mubr.msk.f32.mxu1 %vm1077_vm1, %v1056_v42 }
 0x18e   : > { %v1057_v49 = vadd.f32 %v985_v40, %v897_v24  ;;  %v1058_v53 = vadd.f32 %v987_v48, %v898_v27 }
 0x190   : > { %3211 = vmatmul.mubr.msk.f32.gmra.mrb[22].mxu1 %vm1077_vm1, %v1057_v49 }
 0x191   : > { %v989_v0 = vpop.permute.xlu1 %988  ;;  %v991_v3 = vpop.permute.xlu0 %990  ;;  %3213 = vmatprep.mubr.msk.f32.mxu1 %vm1077_vm1, %v1058_v53 }
 0x192   : > { %v1059_v58 = vadd.f32 %v989_v0, %v899_v28  ;;  %v1060_v61 = vadd.f32 %v991_v3, %v900_v31 }
 0x194   : > { %3214 = vmatmul.mubr.msk.f32.gmra.mrb[24].mxu1 %vm1077_vm1, %v1059_v58 }
 0x195   : > { %v993_v43 = vpop.permute.xlu1 %992  ;;  %v995_v2 = vpop.permute.xlu0 %994  ;;  %3216 = vmatprep.mubr.msk.f32.mxu1 %vm1077_vm1, %v1060_v61 }
 0x196   : > { %v1061_v4 = vadd.f32 %v993_v43, %v901_v32  ;;  %v1062_v7 = vadd.f32 %v995_v2, %v902_v35 }
 0x198   : > { %3217 = vmatmul.mubr.msk.f32.gmra.mrb[26].mxu1 %vm1077_vm1, %v1061_v4 }
 0x199   : > { %v997_v5 = vpop.permute.xlu1 %996  ;;  %v999_v41 = vpop.permute.xlu0 %998  ;;  %3219 = vmatprep.mubr.msk.f32.mxu1 %vm1077_vm1, %v1062_v7 }
 0x19a   : > { %v1063_v47 = vadd.f32 %v997_v5, %v903_v46  ;;  %v1064_v6 = vadd.f32 %v999_v41, %v904_v36 }
 0x19c   : > { %3220 = vmatmul.mubr.msk.f32.gmra.mrb[28].mxu1 %vm1077_vm1, %v1063_v47 }
 0x19d   : > { %v1001_v50 = vpop.permute.xlu1 %1000  ;;  %3222 = vmatprep.mubr.msk.f32.mxu1 %vm1077_vm1, %v1064_v6 }
 0x19e   : > { %v1065_v51 = vadd.f32 %v1001_v50, %v3739_v45  ;;  %v1633_v45 = vld [vmem:[%s4626_s7 + $0x18] sm:$0xff] }
 0x19f   : > { %v3357_v13 = vpack.c.bf16 %v1633_v45, %v1632_v9 }
 0x1a0   : > { %3223 = vmatmul.mubr.msk.f32.gmra.mrb[30].mxu1 %vm1077_vm1, %v1065_v51 }
 0x1a1   : > { %3358 = vmatprep.subr.bf16.mxu0 %v3357_v13 }
 0x1a2   : > { %3360 = vmatpush3.bf16.msra.mxu0 %v3357_v13 }
 0x1a3   : > { %3362 = vmatprep.subr.bf16.mxu0 %v3361_v17 }
 0x1a6   : > { %3364 = vmatpush3.bf16.msra.mxu0 %v3361_v17 }
 0x1a7   : > { %3366 = vmatprep.subr.bf16.mxu0 %v3365_v15 }
 0x1aa   : > { %3368 = vmatpush3.bf16.msra.mxu0 %v3365_v15 }
 0x237   : > { %v3179_v55 = vpop.f32.mrb[0].mxu1 }
 0x238   : > { %v3867_v21 = vadd.f32 %v3179_v55, %v3864_v52  ;;  %v1240_v22 = vpop.f32.mrb[1].mxu1 }
 0x239   : > { %v3870_v25 = vadd.f32 %v3864_v52, %v1240_v22 }
 0x23a   : > { %1504 = vrot.lane.b32.xlu1 %v3867_v21, %s3396_s27 }
 0x23b   : > { %v3182_v26 = vpop.f32.mrb[2].mxu1  ;;  %1502 = vrot.lane.b32.xlu0 %v3870_v25, %s3396_s27  ;;  %v1399_v22 = vmax.f32 %v3870_v25, 0.0 }
 0x23c   : > { %v3877_v16 = vadd.f32 %v3182_v26, %v3864_v52  ;;  %v1250_v19 = vpop.f32.mrb[3].mxu1  ;;  %v1400_v26 = vmax.f32 %v3867_v21, 0.0 }
 0x23d   : > { %v3880_v29 = vadd.f32 %v3864_v52, %v1250_v19  ;;  %v4031_v19 = vld [vmem:[%s4625_s6] ss:$0 sm:$0xff] }
 0x23e   : > { %1508 = vrot.lane.b32.xlu1 %v3877_v16, %s3396_s27 }
 0x23f   : > { %v3185_v30 = vpop.f32.mrb[4].mxu1  ;;  %1506 = vrot.lane.b32.xlu0 %v3880_v29, %s3396_s27 }
 0x240   : > { %v3887_v56 = vadd.f32 %v3185_v30, %v3864_v52  ;;  %v1260_v59 = vpop.f32.mrb[5].mxu1  ;;  %v1401_v30 = vmax.f32 %v3880_v29, 0.0 }
 0x241   : > { %v3890_v33 = vadd.f32 %v3864_v52, %v1260_v59 }
 0x242   : > { %1512 = vrot.lane.b32.xlu1 %v3887_v56, %s3396_s27  ;;  %v1404_v29 = vmax.f32 %v3887_v56, 0.0 }
 0x243   : > { %v3188_v34 = vpop.f32.mrb[6].mxu1  ;;  %1510 = vrot.lane.b32.xlu0 %v3890_v33, %s3396_s27  ;;  %v1403_v21 = vmax.f32 %v3890_v33, 0.0 }
 0x244   : > { %v3897_v20 = vadd.f32 %v3188_v34, %v3864_v52  ;;  %v1270_v23 = vpop.f32.mrb[7].mxu1  ;;  %v1402_v34 = vmax.f32 %v3877_v16, 0.0 }
 0x245   : > { %v3900_v37 = vadd.f32 %v3864_v52, %v1270_v23  ;;  %v1439_v23 = vmul.f32 %v4031_v19, %v1400_v26  ;;  %v1442_v33 = vmul.f32 %v4031_v19, %v1403_v21 }
 0x246   : > { %1516 = vrot.lane.b32.xlu1 %v3897_v20, %s3396_s27 }
 0x247   : > { %v3191_v38 = vpop.f32.mrb[8].mxu1  ;;  %1514 = vrot.lane.b32.xlu0 %v3900_v37, %s3396_s27 }
 0x248   : > { %v3907_v39 = vadd.f32 %v3191_v38, %v3864_v52  ;;  %v1280_v42 = vpop.f32.mrb[9].mxu1 }
 0x249   : > { %v3910_v60 = vadd.f32 %v3864_v52, %v1280_v42 }
 0x24a   : > { %1520 = vrot.lane.b32.xlu1 %v3907_v39, %s3396_s27 }
 0x24b   : > { %v3194_v63 = vpop.f32.mrb[10].mxu1  ;;  %1518 = vrot.lane.b32.xlu0 %v3910_v60, %s3396_s27 }
 0x24c   : > { %v3917_v24 = vadd.f32 %v3194_v63, %v3864_v52  ;;  %v1290_v27 = vpop.f32.mrb[11].mxu1 }
 0x24d   : > { %v3920_v40 = vadd.f32 %v3864_v52, %v1290_v27  ;;  %v1440_v27 = vmul.f32 %v4031_v19, %v1401_v30 }
 0x24e   : > { %1524 = vrot.lane.b32.xlu1 %v3917_v24, %s3396_s27 }
 0x24f   : > { %v3197_v48 = vpop.f32.mrb[12].mxu1  ;;  %1522 = vrot.lane.b32.xlu0 %v3920_v40, %s3396_s27 }
 0x250   : > { %v3927_v49 = vadd.f32 %v3197_v48, %v3864_v52  ;;  %v1300_v53 = vpop.f32.mrb[13].mxu1  ;;  %v1441_v48 = vmul.f32 %v4031_v19, %v1402_v34 }
 0x251   : > { %v3930_v54 = vadd.f32 %v3864_v52, %v1300_v53 }
 0x252   : > { %1528 = vrot.lane.b32.xlu1 %v3927_v49, %s3396_s27 }
 0x253   : > { %v3200_v57 = vpop.f32.mrb[14].mxu1  ;;  %1526 = vrot.lane.b32.xlu0 %v3930_v54, %s3396_s27  ;;  %v1411_v26 = vmax.f32 %v3930_v54, 0.0 }
 0x254   : > { %v3937_v28 = vadd.f32 %v3200_v57, %v3864_v52  ;;  %v1310_v31 = vpop.f32.mrb[15].mxu1 }
 0x255   : > { %v3940_v0 = vadd.f32 %v3864_v52, %v1310_v31  ;;  %v1405_v31 = vmax.f32 %v3900_v37, 0.0  ;;  %v1450_v54 = vmul.f32 %v4031_v19, %v1411_v26 }
 0x256   : > { %1532 = vrot.lane.b32.xlu1 %v3937_v28, %s3396_s27 }
 0x257   : > { %v3203_v3 = vpop.f32.mrb[16].mxu1  ;;  %1530 = vrot.lane.b32.xlu0 %v3940_v0, %s3396_s27  ;;  %v1444_v37 = vmul.f32 %v4031_v19, %v1405_v31 }
 0x258   : > { %v3947_v58 = vadd.f32 %v3203_v3, %v3864_v52  ;;  %v1320_v61 = vpop.f32.mrb[17].mxu1 }
 0x259   : > { %v3950_v62 = vadd.f32 %v3864_v52, %v1320_v61  ;;  %v1406_v61 = vmax.f32 %v3897_v20, 0.0 }
 0x25a   : > { %1536 = vrot.lane.b32.xlu1 %v3947_v58, %s3396_s27 }
 0x25b   : > { %v3206_v1 = vpop.f32.mrb[18].mxu1  ;;  %1534 = vrot.lane.b32.xlu0 %v3950_v62, %s3396_s27 }
 0x25c   : > { %v3957_v32 = vadd.f32 %v3206_v1, %v3864_v52  ;;  %v1330_v35 = vpop.f32.mrb[19].mxu1  ;;  %v1443_v1 = vmul.f32 %v4031_v19, %v1404_v29  ;;  %v1415_v29 = vmax.f32 %v3950_v62, 0.0 }
 0x25d   : > { %v3960_v43 = vadd.f32 %v3864_v52, %v1330_v35 }
 0x25e   : > { %1540 = vrot.lane.b32.xlu1 %v3957_v32, %s3396_s27  ;;  %v1454_v62 = vmul.f32 %v4031_v19, %v1415_v29 }
 0x25f   : > { %v3209_v2 = vpop.f32.mrb[20].mxu1  ;;  %1538 = vrot.lane.b32.xlu0 %v3960_v43, %s3396_s27 }
 0x260   : > { %v3967_v4 = vadd.f32 %v3209_v2, %v3864_v52  ;;  %v1340_v7 = vpop.f32.mrb[21].mxu1 }
 0x261   : > { %v3970_v46 = vadd.f32 %v3864_v52, %v1340_v7  ;;  %v1407_v7 = vmax.f32 %v3910_v60, 0.0 }
 0x262   : > { %1544 = vrot.lane.b32.xlu1 %v3967_v4, %s3396_s27 }
 0x263   : > { %v3212_v36 = vpop.f32.mrb[22].mxu1  ;;  %1542 = vrot.lane.b32.xlu0 %v3970_v46, %s3396_s27  ;;  %v1446_v60 = vmul.f32 %v4031_v19, %v1407_v7 }
 0x264   : > { %v3977_v5 = vadd.f32 %v3212_v36, %v3864_v52  ;;  %v1350_v41 = vpop.f32.mrb[23].mxu1 }
 0x265   : > { %v3980_v47 = vadd.f32 %v3864_v52, %v1350_v41  ;;  %v1408_v41 = vmax.f32 %v3907_v39, 0.0 }
 0x266   : > { %1548 = vrot.lane.b32.xlu1 %v3977_v5, %s3396_s27 }
 0x267   : > { %v3215_v6 = vpop.f32.mrb[24].mxu1  ;;  %1546 = vrot.lane.b32.xlu0 %v3980_v47, %s3396_s27 }
 0x268   : > { %v3987_v50 = vadd.f32 %v3215_v6, %v3864_v52  ;;  %v1360_v51 = vpop.f32.mrb[25].mxu1  ;;  %v1445_v6 = vmul.f32 %v4031_v19, %v1406_v61  ;;  %v1418_v61 = vmax.f32 %v3957_v32, 0.0 }
 0x269   : > { %v3990_v8 = vadd.f32 %v3864_v52, %v1360_v51 }
 0x26a   : > { %1552 = vrot.lane.b32.xlu1 %v3987_v50, %s3396_s27 }
 0x26b   : > { %v3218_v44 = vpop.f32.mrb[26].mxu1  ;;  %1550 = vrot.lane.b32.xlu0 %v3990_v8, %s3396_s27 }
 0x26c   : > { %v3997_v11 = vadd.f32 %v3218_v44, %v3864_v52  ;;  %v1370_v9 = vpop.f32.mrb[27].mxu1 }
 0x26d   : > { %v4000_v45 = vadd.f32 %v3864_v52, %v1370_v9  ;;  %v1409_v9 = vmax.f32 %v3920_v40, 0.0 }
 0x26e   : > { %1556 = vrot.lane.b32.xlu1 %v3997_v11, %s3396_s27 }
 0x26f   : > { %v3221_v10 = vpop.f32.mrb[28].mxu1  ;;  %1554 = vrot.lane.b32.xlu0 %v4000_v45, %s3396_s27  ;;  %v1448_v40 = vmul.f32 %v4031_v19, %v1409_v9 }
 0x270   : > { %v4007_v13 = vadd.f32 %v3221_v10, %v3864_v52  ;;  %v1380_v14 = vpop.f32.mrb[29].mxu1 }
 0x271   : > { %v4010_v17 = vadd.f32 %v3864_v52, %v1380_v14  ;;  %v1410_v14 = vmax.f32 %v3917_v24, 0.0 }
 0x272   : > { %1560 = vrot.lane.b32.xlu1 %v4007_v13, %s3396_s27 }
 0x273   : > { %v3224_v18 = vpop.f32.mrb[30].mxu1  ;;  %1558 = vrot.lane.b32.xlu0 %v4010_v17, %s3396_s27 }
 0x274   : > { %v4017_v12 = vadd.f32 %v3224_v18, %v3864_v52  ;;  %v1390_v15 = vpop.f32.mrb[31].mxu1  ;;  %v1447_v18 = vmul.f32 %v4031_v19, %v1408_v41 }
 0x275   : > { %v4020_v55 = vadd.f32 %v3864_v52, %v1390_v15  ;;  %v1438_v52 = vmul.f32 %v4031_v19, %v1399_v22 }
 0x276   : > { %1564 = vrot.lane.b32.xlu1 %v4017_v12, %s3396_s27 }
 0x277   : > { %1562 = vrot.lane.b32.xlu0 %v4020_v55, %s3396_s27 }
 0x2ac   : > { %v1505_v59 = vpop.permute.xlu1 %1504 }
 0x2ad   : > { %v1503_v38 = vpop.permute.xlu0 %1502  ;;  %v1599_v25 = vadd.f32 %v1505_v59, %v1439_v23  ;;  %v1412_v59 = vmax.f32 %v3927_v49, 0.0 }
 0x2ae   : > { %v1598_v42 = vadd.f32 %v1503_v38, %v1438_v52  ;;  %v1449_v52 = vmul.f32 %v4031_v19, %v1410_v14  ;;  %v1413_v38 = vmax.f32 %v3940_v0, 0.0  ;;  %v1423_v14 = vmax.f32 %v3990_v8, 0.0 }
 0x2af   : > { %v1451_v21 = vmul.f32 %v4031_v19, %v1412_v59  ;;  %v1426_v59 = vmax.f32 %v3997_v11, 0.0 }
 0x2b0   : > { %v1509_v63 = vpop.permute.xlu1 %1508  ;;  %3241 = vmatprep.mubr.msk.f32.mxu0 %vm1645_vm2, %v1598_v42  ;;  %v1452_v0 = vmul.f32 %v4031_v19, %v1413_v38  ;;  %v1462_v8 = vmul.f32 %v4031_v19, %v1423_v14 }
 0x2b1   : > { %v1507_v53 = vpop.permute.xlu0 %1506  ;;  %3242 = vmatmul.mubr.msk.f32.vlgmr.msra.gmra.mrb[32].mxu0 %vm1645_vm2, %v1599_v25  ;;  %v1601_v57 = vadd.f32 %v1509_v63, %v1441_v48  ;;  %v1414_v25 = vmax.f32 %v3937_v28, 0.0 }
 0x2b2   : > { %v1600_v16 = vadd.f32 %v1507_v53, %v1440_v27  ;;  %v1416_v53 = vmax.f32 %v3947_v58, 0.0 }
 0x2b4   : > { %v1513_v3 = vpop.permute.xlu1 %1512  ;;  %3244 = vmatprep.mubr.msk.f32.mxu0 %vm1645_vm2, %v1600_v16  ;;  %v1453_v16 = vmul.f32 %v4031_v19, %v1414_v25 }
 0x2b5   : > { %v1511_v35 = vpop.permute.xlu0 %1510  ;;  %3245 = vmatmul.mubr.msk.f32.gmra.mrb[34].mxu0 %vm1645_vm2, %v1601_v57  ;;  %v1603_v2 = vadd.f32 %v1513_v3, %v1443_v1  ;;  %v1417_v3 = vmax.f32 %v3960_v43, 0.0  ;;  %v1455_v1 = vmul.f32 %v4031_v19, %v1416_v53 }
 0x2b6   : > { %v1602_v56 = vadd.f32 %v1511_v35, %v1442_v33 }
 0x2b7   : > { %v1456_v43 = vmul.f32 %v4031_v19, %v1417_v3  ;;  %v2199_v3 = vld [vmem:[%s4629_s10 + $0x8] sm:$0xff] }
 0x2b8   : > { %v1517_v36 = vpop.permute.xlu1 %1516  ;;  %3247 = vmatprep.mubr.msk.f32.mxu0 %vm1645_vm2, %v1602_v56 }
 0x2b9   : > { %v1515_v51 = vpop.permute.xlu0 %1514  ;;  %3248 = vmatmul.mubr.msk.f32.gmra.mrb[36].mxu0 %vm1645_vm2, %v1603_v2  ;;  %v1605_v44 = vadd.f32 %v1517_v36, %v1445_v6  ;;  %v1419_v2 = vmax.f32 %v3970_v46, 0.0  ;;  %v1420_v36 = vmax.f32 %v3967_v4, 0.0 }
 0x2ba   : > { %v1604_v20 = vadd.f32 %v1515_v51, %v1444_v37  ;;  %v1457_v37 = vmul.f32 %v4031_v19, %v1418_v61  ;;  %v1421_v51 = vmax.f32 %v3980_v47, 0.0 }
 0x2bb   : > { %v1458_v46 = vmul.f32 %v4031_v19, %v1419_v2  ;;  %v1459_v9 = vmul.f32 %v4031_v19, %v1420_v36 }
 0x2bc   : > { %v1521_v10 = vpop.permute.xlu1 %1520  ;;  %3250 = vmatprep.mubr.msk.f32.mxu0 %vm1645_vm2, %v1604_v20  ;;  %v1460_v47 = vmul.f32 %v4031_v19, %v1421_v51 }
 0x2bd   : > { %v1519_v15 = vpop.permute.xlu0 %1518  ;;  %3251 = vmatmul.mubr.msk.f32.gmra.mrb[38].mxu0 %vm1645_vm2, %v1605_v44  ;;  %v1607_v22 = vadd.f32 %v1521_v10, %v1447_v18  ;;  %v1422_v44 = vmax.f32 %v3977_v5, 0.0 }
 0x2be   : > { %v1606_v39 = vadd.f32 %v1519_v15, %v1446_v60  ;;  %v1424_v15 = vmax.f32 %v3987_v50, 0.0 }
 0x2c0   : > { %v1525_v30 = vpop.permute.xlu1 %1524  ;;  %3253 = vmatprep.mubr.msk.f32.mxu0 %vm1645_vm2, %v1606_v39  ;;  %v1461_v39 = vmul.f32 %v4031_v19, %v1422_v44 }
 0x2c1   : > { %v1523_v34 = vpop.permute.xlu0 %1522  ;;  %3254 = vmatmul.mubr.msk.f32.gmra.mrb[40].mxu0 %vm1645_vm2, %v1607_v22  ;;  %v1609_v23 = vadd.f32 %v1525_v30, %v1449_v52  ;;  %v1425_v30 = vmax.f32 %v4000_v45, 0.0  ;;  %v1463_v52 = vmul.f32 %v4031_v19, %v1424_v15 }
 0x2c2   : > { %v1608_v24 = vadd.f32 %v1523_v34, %v1448_v40 }
 0x2c3   : > { %v1464_v45 = vmul.f32 %v4031_v19, %v1425_v30 }
 0x2c4   : > { %v1529_v42 = vpop.permute.xlu1 %1528  ;;  %3256 = vmatprep.mubr.msk.f32.mxu0 %vm1645_vm2, %v1608_v24 }
 0x2c5   : > { %v1527_v63 = vpop.permute.xlu0 %1526  ;;  %3257 = vmatmul.mubr.msk.f32.gmra.mrb[42].mxu0 %vm1645_vm2, %v1609_v23  ;;  %v1611_v27 = vadd.f32 %v1529_v42, %v1451_v21  ;;  %v1427_v23 = vmax.f32 %v4010_v17, 0.0  ;;  %v1428_v42 = vmax.f32 %v4007_v13, 0.0 }
 0x2c6   : > { %v1610_v49 = vadd.f32 %v1527_v63, %v1450_v54  ;;  %v1465_v54 = vmul.f32 %v4031_v19, %v1426_v59  ;;  %v1429_v63 = vmax.f32 %v4020_v55, 0.0 }
 0x2c7   : > { %v1466_v17 = vmul.f32 %v4031_v19, %v1427_v23  ;;  %v1467_v29 = vmul.f32 %v4031_v19, %v1428_v42 }
 0x2c8   : > { %v1533_v48 = vpop.permute.xlu1 %1532  ;;  %3259 = vmatprep.mubr.msk.f32.mxu0 %vm1645_vm2, %v1610_v49 }
 0x2c9   : > { %v1531_v57 = vpop.permute.xlu0 %1530  ;;  %3260 = vmatmul.mubr.msk.f32.gmra.mrb[44].mxu0 %vm1645_vm2, %v1611_v27  ;;  %v1613_v31 = vadd.f32 %v1533_v48, %v1453_v16  ;;  %v1430_v27 = vmax.f32 %v4017_v12, 0.0  ;;  %v1468_v16 = vmul.f32 %v4031_v19, %v1429_v63  ;;  %v2198_v12 = vld [vmem:[%s4629_s10] sm:$0xff] }
 0x2ca   : > { %v1612_v28 = vadd.f32 %v1531_v57, %v1452_v0 }
 0x2cb   : > { %v1469_v55 = vmul.f32 %v4031_v19, %v1430_v27  ;;  %v2200_v19 = vld [vmem:[%s4629_s10 + $0x10] sm:$0xff] }
 0x2cc   : > { %v1537_v33 = vpop.permute.xlu1 %1536  ;;  %3262 = vmatprep.mubr.msk.f32.mxu0 %vm1645_vm2, %v1612_v28 }
 0x2cd   : > { %v1535_v35 = vpop.permute.xlu0 %1534  ;;  %3263 = vmatmul.mubr.msk.f32.gmra.mrb[46].mxu0 %vm1645_vm2, %v1613_v31  ;;  %v1615_v56 = vadd.f32 %v1537_v33, %v1455_v1  ;;  %v3369_v33 = vpack.c.bf16 %v2199_v3, %v2198_v12  ;;  %v4142_v1 = vld [vmem:[%s4627_s8] ss:$0 sm:$0xff] }
 0x2ce   : > { %v1614_v58 = vadd.f32 %v1535_v35, %v1454_v62  ;;  %v2201_v62 = vld [vmem:[%s4629_s10 + $0x18] sm:$0xff] }
 0x2cf   : > { %3370 = vmatprep.subr.bf16.mxu1 %v3369_v33  ;;  %v3373_v61 = vpack.c.bf16 %v2201_v62, %v2200_v19 }
 0x2d0   : > { %v1541_v7 = vpop.permute.xlu1 %1540  ;;  %3265 = vmatprep.mubr.msk.f32.mxu0 %vm1645_vm2, %v1614_v58  ;;  %3372 = vmatpush3.bf16.msra.mxu1 %v3369_v33 }
 0x2d1   : > { %v1539_v41 = vpop.permute.xlu0 %1538  ;;  %3266 = vmatmul.mubr.msk.f32.gmra.mrb[48].mxu0 %vm1645_vm2, %v1615_v56  ;;  %v1617_v6 = vadd.f32 %v1541_v7, %v1457_v37  ;;  %3374 = vmatprep.subr.bf16.mxu1 %v3373_v61 }
 0x2d2   : > { %v1616_v32 = vadd.f32 %v1539_v41, %v1456_v43 }
 0x2d4   : > { %v1545_v20 = vpop.permute.xlu1 %1544  ;;  %3268 = vmatprep.mubr.msk.f32.mxu0 %vm1645_vm2, %v1616_v32  ;;  %3376 = vmatpush3.bf16.msra.mxu1 %v3373_v61 }
 0x2d5   : > { %v1543_v10 = vpop.permute.xlu0 %1542  ;;  %3269 = vmatmul.mubr.msk.f32.gmra.mrb[50].mxu0 %vm1645_vm2, %v1617_v6  ;;  %v1619_v60 = vadd.f32 %v1545_v20, %v1459_v9 }
 0x2d6   : > { %v1618_v4 = vadd.f32 %v1543_v10, %v1458_v46 }
 0x2d8   : > { %v1549_v18 = vpop.permute.xlu1 %1548  ;;  %3271 = vmatprep.mubr.msk.f32.mxu0 %vm1645_vm2, %v1618_v4 }
 0x2d9   : > { %v1547_v22 = vpop.permute.xlu0 %1546  ;;  %3272 = vmatmul.mubr.msk.f32.gmra.mrb[52].mxu0 %vm1645_vm2, %v1619_v60  ;;  %v1621_v26 = vadd.f32 %v1549_v18, %v1461_v39 }
 0x2da   : > { %v1620_v5 = vadd.f32 %v1547_v22, %v1460_v47 }
 0x2dc   : > { %v1553_v40 = vpop.permute.xlu1 %1552  ;;  %3274 = vmatprep.mubr.msk.f32.mxu0 %vm1645_vm2, %v1620_v5 }
 0x2dd   : > { %v1551_v34 = vpop.permute.xlu0 %1550  ;;  %3275 = vmatmul.mubr.msk.f32.gmra.mrb[54].mxu0 %vm1645_vm2, %v1621_v26  ;;  %v1623_v24 = vadd.f32 %v1553_v40, %v1463_v52 }
 0x2de   : > { %v1622_v50 = vadd.f32 %v1551_v34, %v1462_v8 }
 0x2e0   : > { %v1557_v38 = vpop.permute.xlu1 %1556  ;;  %3277 = vmatprep.mubr.msk.f32.mxu0 %vm1645_vm2, %v1622_v50 }
 0x2e1   : > { %v1555_v25 = vpop.permute.xlu0 %1554  ;;  %3278 = vmatmul.mubr.msk.f32.gmra.mrb[56].mxu0 %vm1645_vm2, %v1623_v24  ;;  %v1625_v21 = vadd.f32 %v1557_v38, %v1465_v54 }
 0x2e2   : > { %v1624_v11 = vadd.f32 %v1555_v25, %v1464_v45 }
 0x2e4   : > { %v1561_v49 = vpop.permute.xlu1 %1560  ;;  %3280 = vmatprep.mubr.msk.f32.mxu0 %vm1645_vm2, %v1624_v11 }
 0x2e5   : > { %v1559_v48 = vpop.permute.xlu0 %1558  ;;  %3281 = vmatmul.mubr.msk.f32.gmra.mrb[58].mxu0 %vm1645_vm2, %v1625_v21  ;;  %v1627_v0 = vadd.f32 %v1561_v49, %v1467_v29 }
 0x2e6   : > { %v1626_v13 = vadd.f32 %v1559_v48, %v1466_v17 }
 0x2e8   : > { %v1565_v53 = vpop.permute.xlu1 %1564  ;;  %3283 = vmatprep.mubr.msk.f32.mxu0 %vm1645_vm2, %v1626_v13 }
 0x2e9   : > { %v1563_v57 = vpop.permute.xlu0 %1562  ;;  %3284 = vmatmul.mubr.msk.f32.gmra.mrb[60].mxu0 %vm1645_vm2, %v1627_v0  ;;  %v1629_v31 = vadd.f32 %v1565_v53, %v1469_v55 }
 0x2ea   : > { %v1628_v28 = vadd.f32 %v1563_v57, %v1468_v16 }
 0x2ec   : > { %3286 = vmatprep.mubr.msk.f32.mxu0 %vm1645_vm2, %v1628_v28 }
 0x2ed   : > { %3287 = vmatmul.mubr.msk.f32.gmra.mrb[62].mxu0 %vm1645_vm2, %v1629_v31 }
 0x384   : > { %v3243_v35 = vpop.f32.mrb[32].mxu0 }
 0x385   : > { %v4145_v58 = vadd.f32 %v3243_v35, %v4142_v1  ;;  %v1808_v56 = vpop.f32.mrb[33].mxu0 }
 0x386   : > { %v4148_v2 = vadd.f32 %v4142_v1, %v1808_v56 }
 0x387   : > { %2072 = vrot.lane.b32.xlu1 %v4145_v58, %s3395_s18 }
 0x388   : > { %v3246_v7 = vpop.f32.mrb[34].mxu0  ;;  %2070 = vrot.lane.b32.xlu0 %v4148_v2, %s3395_s18  ;;  %v1967_v56 = vmax.f32 %v4148_v2, 0.0 }
 0x389   : > { %v4155_v43 = vadd.f32 %v3246_v7, %v4142_v1  ;;  %v1818_v36 = vpop.f32.mrb[35].mxu0  ;;  %v1968_v7 = vmax.f32 %v4145_v58, 0.0 }
 0x38a   : > { %v4158_v37 = vadd.f32 %v4142_v1, %v1818_v36  ;;  %v4309_v36 = vld [vmem:[%s4628_s9] ss:$0 sm:$0xff] }
 0x38b   : > { %2076 = vrot.lane.b32.xlu1 %v4155_v43, %s3395_s18 }
 0x38c   : > { %v3249_v41 = vpop.f32.mrb[36].mxu0  ;;  %2074 = vrot.lane.b32.xlu0 %v4158_v37, %s3395_s18 }
 0x38d   : > { %v4165_v32 = vadd.f32 %v3249_v41, %v4142_v1  ;;  %v1828_v6 = vpop.f32.mrb[37].mxu0  ;;  %v1969_v41 = vmax.f32 %v4158_v37, 0.0 }
 0x38e   : > { %v4168_v51 = vadd.f32 %v4142_v1, %v1828_v6 }
 0x38f   : > { %2080 = vrot.lane.b32.xlu1 %v4165_v32, %s3395_s18 }
 0x390   : > { %v3252_v20 = vpop.f32.mrb[38].mxu0  ;;  %2078 = vrot.lane.b32.xlu0 %v4168_v51, %s3395_s18  ;;  %v1971_v2 = vmax.f32 %v4168_v51, 0.0 }
 0x391   : > { %v4175_v46 = vadd.f32 %v3252_v20, %v4142_v1  ;;  %v1838_v44 = vpop.f32.mrb[39].mxu0  ;;  %v1970_v20 = vmax.f32 %v4155_v43, 0.0 }
 0x392   : > { %v4178_v9 = vadd.f32 %v4142_v1, %v1838_v44  ;;  %v2007_v44 = vmul.f32 %v4309_v36, %v1968_v7  ;;  %v2010_v51 = vmul.f32 %v4309_v36, %v1971_v2 }
 0x393   : > { %2084 = vrot.lane.b32.xlu1 %v4175_v46, %s3395_s18  ;;  %v2009_v37 = vmul.f32 %v4309_v36, %v1970_v20 }
 0x394   : > { %v3255_v10 = vpop.f32.mrb[40].mxu0  ;;  %2082 = vrot.lane.b32.xlu0 %v4178_v9, %s3395_s18 }
 0x395   : > { %v4185_v4 = vadd.f32 %v3255_v10, %v4142_v1  ;;  %v1848_v60 = vpop.f32.mrb[41].mxu0 }
 0x396   : > { %v4188_v14 = vadd.f32 %v4142_v1, %v1848_v60 }
 0x397   : > { %2088 = vrot.lane.b32.xlu1 %v4185_v4, %s3395_s18 }
 0x398   : > { %v3258_v18 = vpop.f32.mrb[42].mxu0  ;;  %2086 = vrot.lane.b32.xlu0 %v4188_v14, %s3395_s18 }
 0x399   : > { %v4195_v47 = vadd.f32 %v3258_v18, %v4142_v1  ;;  %v1858_v15 = vpop.f32.mrb[43].mxu0 }
 0x39a   : > { %v4198_v39 = vadd.f32 %v4142_v1, %v1858_v15  ;;  %v2008_v15 = vmul.f32 %v4309_v36, %v1969_v41 }
 0x39b   : > { %2092 = vrot.lane.b32.xlu1 %v4195_v47, %s3395_s18 }
 0x39c   : > { %v3261_v22 = vpop.f32.mrb[44].mxu0  ;;  %2090 = vrot.lane.b32.xlu0 %v4198_v39, %s3395_s18 }
 0x39d   : > { %v4205_v5 = vadd.f32 %v3261_v22, %v4142_v1  ;;  %v1868_v26 = vpop.f32.mrb[45].mxu0  ;;  %v1972_v22 = vmax.f32 %v4165_v32, 0.0 }
 0x39e   : > { %v4208_v30 = vadd.f32 %v4142_v1, %v1868_v26 }
 0x39f   : > { %2096 = vrot.lane.b32.xlu1 %v4205_v5, %s3395_s18 }
 0x3a0   : > { %v3264_v40 = vpop.f32.mrb[46].mxu0  ;;  %2094 = vrot.lane.b32.xlu0 %v4208_v30, %s3395_s18  ;;  %v1979_v7 = vmax.f32 %v4208_v30, 0.0 }
 0x3a1   : > { %v4215_v8 = vadd.f32 %v3264_v40, %v4142_v1  ;;  %v1878_v59 = vpop.f32.mrb[47].mxu0 }
 0x3a2   : > { %v4218_v52 = vadd.f32 %v4142_v1, %v1878_v59  ;;  %v1973_v59 = vmax.f32 %v4178_v9, 0.0  ;;  %v2018_v30 = vmul.f32 %v4309_v36, %v1979_v7 }
 0x3a3   : > { %2100 = vrot.lane.b32.xlu1 %v4215_v8, %s3395_s18 }
 0x3a4   : > { %v3267_v34 = vpop.f32.mrb[48].mxu0  ;;  %2098 = vrot.lane.b32.xlu0 %v4218_v52, %s3395_s18  ;;  %v2012_v9 = vmul.f32 %v4309_v36, %v1973_v59 }
 0x3a5   : > { %v4225_v50 = vadd.f32 %v3267_v34, %v4142_v1  ;;  %v1888_v24 = vpop.f32.mrb[49].mxu0 }
 0x3a6   : > { %v4228_v23 = vadd.f32 %v4142_v1, %v1888_v24  ;;  %v1974_v24 = vmax.f32 %v4175_v46, 0.0 }
 0x3a7   : > { %2104 = vrot.lane.b32.xlu1 %v4225_v50, %s3395_s18 }
 0x3a8   : > { %v3270_v38 = vpop.f32.mrb[50].mxu0  ;;  %2102 = vrot.lane.b32.xlu0 %v4228_v23, %s3395_s18 }
 0x3a9   : > { %v4235_v45 = vadd.f32 %v3270_v38, %v4142_v1  ;;  %v1898_v42 = vpop.f32.mrb[51].mxu0  ;;  %v2011_v38 = vmul.f32 %v4309_v36, %v1972_v22  ;;  %v1983_v22 = vmax.f32 %v4228_v23, 0.0 }
 0x3aa   : > { %v4238_v54 = vadd.f32 %v4142_v1, %v1898_v42 }
 0x3ab   : > { %2108 = vrot.lane.b32.xlu1 %v4235_v45, %s3395_s18  ;;  %v2022_v23 = vmul.f32 %v4309_v36, %v1983_v22 }
 0x3ac   : > { %v3273_v25 = vpop.f32.mrb[52].mxu0  ;;  %2106 = vrot.lane.b32.xlu0 %v4238_v54, %s3395_s18 }
 0x3ad   : > { %v4245_v11 = vadd.f32 %v3273_v25, %v4142_v1  ;;  %v1908_v21 = vpop.f32.mrb[53].mxu0 }
 0x3ae   : > { %v4248_v63 = vadd.f32 %v4142_v1, %v1908_v21  ;;  %v1975_v21 = vmax.f32 %v4188_v14, 0.0 }
 0x3af   : > { %2112 = vrot.lane.b32.xlu1 %v4245_v11, %s3395_s18 }
 0x3b0   : > { %v3276_v49 = vpop.f32.mrb[54].mxu0  ;;  %2110 = vrot.lane.b32.xlu0 %v4248_v63, %s3395_s18  ;;  %v2014_v14 = vmul.f32 %v4309_v36, %v1975_v21 }
 0x3b1   : > { %v4255_v17 = vadd.f32 %v3276_v49, %v4142_v1  ;;  %v1918_v27 = vpop.f32.mrb[55].mxu0 }
 0x3b2   : > { %v4258_v29 = vadd.f32 %v4142_v1, %v1918_v27  ;;  %v1976_v27 = vmax.f32 %v4185_v4, 0.0 }
 0x3b3   : > { %2116 = vrot.lane.b32.xlu1 %v4255_v17, %s3395_s18 }
 0x3b4   : > { %v3279_v48 = vpop.f32.mrb[56].mxu0  ;;  %2114 = vrot.lane.b32.xlu0 %v4258_v29, %s3395_s18 }
 0x3b5   : > { %v4265_v13 = vadd.f32 %v3279_v48, %v4142_v1  ;;  %v1928_v0 = vpop.f32.mrb[57].mxu0  ;;  %v2013_v48 = vmul.f32 %v4309_v36, %v1974_v24  ;;  %v1986_v24 = vmax.f32 %v4235_v45, 0.0 }
 0x3b6   : > { %v4268_v53 = vadd.f32 %v4142_v1, %v1928_v0 }
 0x3b7   : > { %2120 = vrot.lane.b32.xlu1 %v4265_v13, %s3395_s18 }
 0x3b8   : > { %v3282_v16 = vpop.f32.mrb[58].mxu0  ;;  %2118 = vrot.lane.b32.xlu0 %v4268_v53, %s3395_s18 }
 0x3b9   : > { %v4275_v55 = vadd.f32 %v3282_v16, %v4142_v1  ;;  %v1938_v57 = vpop.f32.mrb[59].mxu0 }
 0x3ba   : > { %v4278_v28 = vadd.f32 %v4142_v1, %v1938_v57  ;;  %v1977_v57 = vmax.f32 %v4198_v39, 0.0 }
 0x3bb   : > { %2124 = vrot.lane.b32.xlu1 %v4275_v55, %s3395_s18 }
 0x3bc   : > { %v3285_v31 = vpop.f32.mrb[60].mxu0  ;;  %2122 = vrot.lane.b32.xlu0 %v4278_v28, %s3395_s18  ;;  %v2016_v39 = vmul.f32 %v4309_v36, %v1977_v57 }
 0x3bd   : > { %v4285_v12 = vadd.f32 %v3285_v31, %v4142_v1  ;;  %v1948_v3 = vpop.f32.mrb[61].mxu0 }
 0x3be   : > { %v4288_v33 = vadd.f32 %v4142_v1, %v1948_v3  ;;  %v1978_v3 = vmax.f32 %v4195_v47, 0.0 }
 0x3bf   : > { %2128 = vrot.lane.b32.xlu1 %v4285_v12, %s3395_s18 }
 0x3c0   : > { %v3288_v19 = vpop.f32.mrb[62].mxu0  ;;  %2126 = vrot.lane.b32.xlu0 %v4288_v33, %s3395_s18 }
 0x3c1   : > { %v4295_v62 = vadd.f32 %v3288_v19, %v4142_v1  ;;  %v1958_v61 = vpop.f32.mrb[63].mxu0  ;;  %v2015_v19 = vmul.f32 %v4309_v36, %v1976_v27 }
 0x3c2   : > { %v4298_v35 = vadd.f32 %v4142_v1, %v1958_v61  ;;  %v2006_v1 = vmul.f32 %v4309_v36, %v1967_v56 }
 0x3c3   : > { %2132 = vrot.lane.b32.xlu1 %v4295_v62, %s3395_s18 }
 0x3c4   : > { %2130 = vrot.lane.b32.xlu0 %v4298_v35, %s3395_s18 }
 0x3f9   : > { %v2073_v6 = vpop.permute.xlu1 %2072 }
 0x3fa   : > { %v2071_v10 = vpop.permute.xlu0 %2070  ;;  %v2167_v18 = vadd.f32 %v2073_v6, %v2007_v44  ;;  %v1980_v6 = vmax.f32 %v4205_v5, 0.0 }
 0x3fb   : > { %v2166_v60 = vadd.f32 %v2071_v10, %v2006_v1  ;;  %v2017_v1 = vmul.f32 %v4309_v36, %v1978_v3  ;;  %v1981_v10 = vmax.f32 %v4218_v52, 0.0  ;;  %v1991_v3 = vmax.f32 %v4268_v53, 0.0 }
 0x3fc   : > { %v2019_v2 = vmul.f32 %v4309_v36, %v1980_v6  ;;  %v1994_v6 = vmax.f32 %v4275_v55, 0.0 }
 0x3fd   : > { %v2077_v58 = vpop.permute.xlu1 %2076  ;;  %3297 = vmatprep.mubr.msk.f32.mxu1 %vm1077_vm1, %v2166_v60  ;;  %v2020_v52 = vmul.f32 %v4309_v36, %v1981_v10  ;;  %v2030_v53 = vmul.f32 %v4309_v36, %v1991_v3 }
 0x3fe   : > { %v2075_v26 = vpop.permute.xlu0 %2074  ;;  %3298 = vmatmul.mubr.msk.f32.vlgmr.msra.gmra.mrb[32].mxu1 %vm1077_vm1, %v2167_v18  ;;  %v2169_v40 = vadd.f32 %v2077_v58, %v2009_v37  ;;  %v1982_v18 = vmax.f32 %v4215_v8, 0.0 }
 0x3ff   : > { %v2168_v43 = vadd.f32 %v2075_v26, %v2008_v15  ;;  %v1984_v26 = vmax.f32 %v4225_v50, 0.0 }
 0x401   : > { %v2081_v34 = vpop.permute.xlu1 %2080  ;;  %3300 = vmatprep.mubr.msk.f32.mxu1 %vm1077_vm1, %v2168_v43  ;;  %v2021_v43 = vmul.f32 %v4309_v36, %v1982_v18 }
 0x402   : > { %v2079_v42 = vpop.permute.xlu0 %2078  ;;  %3301 = vmatmul.mubr.msk.f32.gmra.mrb[34].mxu1 %vm1077_vm1, %v2169_v40  ;;  %v2171_v25 = vadd.f32 %v2081_v34, %v2011_v38  ;;  %v1985_v34 = vmax.f32 %v4238_v54, 0.0  ;;  %v2023_v38 = vmul.f32 %v4309_v36, %v1984_v26 }
 0x403   : > { %v2170_v32 = vadd.f32 %v2079_v42, %v2010_v51 }
 0x404   : > { %v2024_v54 = vmul.f32 %v4309_v36, %v1985_v34 }
 0x405   : > { %v2085_v49 = vpop.permute.xlu1 %2084  ;;  %3303 = vmatprep.mubr.msk.f32.mxu1 %vm1077_vm1, %v2170_v32 }
 0x406   : > { %v2083_v0 = vpop.permute.xlu0 %2082  ;;  %3304 = vmatmul.mubr.msk.f32.gmra.mrb[36].mxu1 %vm1077_vm1, %v2171_v25  ;;  %v2173_v16 = vadd.f32 %v2085_v49, %v2013_v48  ;;  %v1987_v25 = vmax.f32 %v4248_v63, 0.0  ;;  %v1988_v49 = vmax.f32 %v4245_v11, 0.0 }
 0x407   : > { %v2172_v46 = vadd.f32 %v2083_v0, %v2012_v9  ;;  %v2025_v9 = vmul.f32 %v4309_v36, %v1986_v24  ;;  %v1989_v0 = vmax.f32 %v4258_v29, 0.0  ;;  %v4415_v24 = vld [vmem:[%s4631_s12] ss:$0 sm:$0xff] }
 0x408   : > { %v2026_v63 = vmul.f32 %v4309_v36, %v1987_v25  ;;  %v2027_v57 = vmul.f32 %v4309_v36, %v1988_v49 }
 0x409   : > { %v2089_v31 = vpop.permute.xlu1 %2088  ;;  %3306 = vmatprep.mubr.msk.f32.mxu1 %vm1077_vm1, %v2172_v46  ;;  %v2028_v29 = vmul.f32 %v4309_v36, %v1989_v0 }
 0x40a   : > { %v2087_v61 = vpop.permute.xlu0 %2086  ;;  %3307 = vmatmul.mubr.msk.f32.gmra.mrb[38].mxu1 %vm1077_vm1, %v2173_v16  ;;  %v2175_v56 = vadd.f32 %v2089_v31, %v2015_v19  ;;  %v1990_v16 = vmax.f32 %v4255_v17, 0.0 }
 0x40b   : > { %v2174_v4 = vadd.f32 %v2087_v61, %v2014_v14  ;;  %v1992_v61 = vmax.f32 %v4265_v13, 0.0 }
 0x40d   : > { %v2093_v41 = vpop.permute.xlu1 %2092  ;;  %3309 = vmatprep.mubr.msk.f32.mxu1 %vm1077_vm1, %v2174_v4  ;;  %v2029_v4 = vmul.f32 %v4309_v36, %v1990_v16 }
 0x40e   : > { %v2091_v20 = vpop.permute.xlu0 %2090  ;;  %3310 = vmatmul.mubr.msk.f32.gmra.mrb[40].mxu1 %vm1077_vm1, %v2175_v56  ;;  %v2177_v44 = vadd.f32 %v2093_v41, %v2017_v1  ;;  %v1993_v41 = vmax.f32 %v4278_v28, 0.0  ;;  %v2031_v1 = vmul.f32 %v4309_v36, %v1992_v61 }
 0x40f   : > { %v2176_v47 = vadd.f32 %v2091_v20, %v2016_v39 }
 0x410   : > { %v2032_v28 = vmul.f32 %v4309_v36, %v1993_v41 }
 0x411   : > { %v2097_v60 = vpop.permute.xlu1 %2096  ;;  %3312 = vmatprep.mubr.msk.f32.mxu1 %vm1077_vm1, %v2176_v47 }
 0x412   : > { %v2095_v58 = vpop.permute.xlu0 %2094  ;;  %3313 = vmatmul.mubr.msk.f32.gmra.mrb[42].mxu1 %vm1077_vm1, %v2177_v44  ;;  %v2179_v15 = vadd.f32 %v2097_v60, %v2019_v2  ;;  %v1995_v44 = vmax.f32 %v4288_v33, 0.0  ;;  %v1996_v60 = vmax.f32 %v4285_v12, 0.0 }
 0x413   : > { %v2178_v5 = vadd.f32 %v2095_v58, %v2018_v30  ;;  %v2033_v30 = vmul.f32 %v4309_v36, %v1994_v6  ;;  %v1997_v58 = vmax.f32 %v4298_v35, 0.0 }
 0x414   : > { %v2034_v33 = vmul.f32 %v4309_v36, %v1995_v44  ;;  %v2035_v22 = vmul.f32 %v4309_v36, %v1996_v60 }
 0x415   : > { %v2101_v37 = vpop.permute.xlu1 %2100  ;;  %3315 = vmatprep.mubr.msk.f32.mxu1 %vm1077_vm1, %v2178_v5 }
 0x416   : > { %v2099_v40 = vpop.permute.xlu0 %2098  ;;  %3316 = vmatmul.mubr.msk.f32.gmra.mrb[44].mxu1 %vm1077_vm1, %v2179_v15  ;;  %v2181_v59 = vadd.f32 %v2101_v37, %v2021_v43  ;;  %v1998_v15 = vmax.f32 %v4295_v62, 0.0  ;;  %v2036_v43 = vmul.f32 %v4309_v36, %v1997_v58  ;;  %v4408_v62 = vld [vmem:[%s4630_s11] ss:$0 sm:$0xff] }
 0x417   : > { %v2180_v8 = vadd.f32 %v2099_v40, %v2020_v52 }
 0x418   : > { %v2037_v35 = vmul.f32 %v4309_v36, %v1998_v15 }
 0x419   : > { %v2105_v51 = vpop.permute.xlu1 %2104  ;;  %3318 = vmatprep.mubr.msk.f32.mxu1 %vm1077_vm1, %v2180_v8 }
 0x41a   : > { %v2103_v42 = vpop.permute.xlu0 %2102  ;;  %3319 = vmatmul.mubr.msk.f32.gmra.mrb[46].mxu1 %vm1077_vm1, %v2181_v59  ;;  %v2183_v32 = vadd.f32 %v2105_v51, %v2023_v38 }
 0x41b   : > { %v2182_v50 = vadd.f32 %v2103_v42, %v2022_v23 }
 0x41d   : > { %v2109_v21 = vpop.permute.xlu1 %2108  ;;  %3321 = vmatprep.mubr.msk.f32.mxu1 %vm1077_vm1, %v2182_v50 }
 0x41e   : > { %v2107_v27 = vpop.permute.xlu0 %2106  ;;  %3322 = vmatmul.mubr.msk.f32.gmra.mrb[48].mxu1 %vm1077_vm1, %v2183_v32  ;;  %v2185_v48 = vadd.f32 %v2109_v21, %v2025_v9 }
 0x41f   : > { %v2184_v45 = vadd.f32 %v2107_v27, %v2024_v54 }
 0x421   : > { %v2113_v46 = vpop.permute.xlu1 %2112  ;;  %3324 = vmatprep.mubr.msk.f32.mxu1 %vm1077_vm1, %v2184_v45 }
 0x422   : > { %v2111_v31 = vpop.permute.xlu0 %2110  ;;  %3325 = vmatmul.mubr.msk.f32.gmra.mrb[50].mxu1 %vm1077_vm1, %v2185_v48  ;;  %v2187_v14 = vadd.f32 %v2113_v46, %v2027_v57 }
 0x423   : > { %v2186_v11 = vadd.f32 %v2111_v31, %v2026_v63 }
 0x425   : > { %v2117_v19 = vpop.permute.xlu1 %2116  ;;  %3327 = vmatprep.mubr.msk.f32.mxu1 %vm1077_vm1, %v2186_v11 }
 0x426   : > { %v2115_v56 = vpop.permute.xlu0 %2114  ;;  %3328 = vmatmul.mubr.msk.f32.gmra.mrb[52].mxu1 %vm1077_vm1, %v2187_v14  ;;  %v2189_v7 = vadd.f32 %v2117_v19, %v2029_v4 }
 0x427   : > { %v2188_v17 = vadd.f32 %v2115_v56, %v2028_v29 }
 0x429   : > { %v2121_v39 = vpop.permute.xlu1 %2120  ;;  %3330 = vmatprep.mubr.msk.f32.mxu1 %vm1077_vm1, %v2188_v17 }
 0x42a   : > { %v2119_v20 = vpop.permute.xlu0 %2118  ;;  %3331 = vmatmul.mubr.msk.f32.gmra.mrb[54].mxu1 %vm1077_vm1, %v2189_v7  ;;  %v2191_v47 = vadd.f32 %v2121_v39, %v2031_v1 }
 0x42b   : > { %v2190_v13 = vadd.f32 %v2119_v20, %v2030_v53 }
 0x42d   : > { %v2125_v10 = vpop.permute.xlu1 %2124  ;;  %3333 = vmatprep.mubr.msk.f32.mxu1 %vm1077_vm1, %v2190_v13 }
 0x42e   : > { %v2123_v18 = vpop.permute.xlu0 %2122  ;;  %3334 = vmatmul.mubr.msk.f32.gmra.mrb[56].mxu1 %vm1077_vm1, %v2191_v47  ;;  %v2193_v2 = vadd.f32 %v2125_v10, %v2033_v30 }
 0x42f   : > { %v2192_v55 = vadd.f32 %v2123_v18, %v2032_v28 }
 0x431   : > { %v2129_v5 = vpop.permute.xlu1 %2128  ;;  %3336 = vmatprep.mubr.msk.f32.mxu1 %vm1077_vm1, %v2192_v55 }
 0x432   : > { %v2127_v37 = vpop.permute.xlu0 %2126  ;;  %3337 = vmatmul.mubr.msk.f32.gmra.mrb[58].mxu1 %vm1077_vm1, %v2193_v2  ;;  %v2195_v52 = vadd.f32 %v2129_v5, %v2035_v22 }
 0x433   : > { %v2194_v12 = vadd.f32 %v2127_v37, %v2034_v33 }
 0x435   : > { %v2133_v26 = vpop.permute.xlu1 %2132  ;;  %3339 = vmatprep.mubr.msk.f32.mxu1 %vm1077_vm1, %v2194_v12 }
 0x436   : > { %v2131_v40 = vpop.permute.xlu0 %2130  ;;  %3340 = vmatmul.mubr.msk.f32.gmra.mrb[60].mxu1 %vm1077_vm1, %v2195_v52  ;;  %v2197_v59 = vadd.f32 %v2133_v26, %v2037_v35 }
 0x437   : > { %v2196_v8 = vadd.f32 %v2131_v40, %v2036_v43 }
 0x439   : > { %3342 = vmatprep.mubr.msk.f32.mxu1 %vm1077_vm1, %v2196_v8 }
 0x43a   : > { %3343 = vmatmul.mubr.msk.f32.gmra.mrb[62].mxu1 %vm1077_vm1, %v2197_v59 }
 0x4d1   : > { %v3299_v34 = vpop.f32.mrb[32].mxu1 }
 0x4d2   : > { %v2377_v51 = vadd.f32 %v3299_v34, %v4408_v62  ;;  %v2371_v23 = vpop.f32.mrb[33].mxu1 }
 0x4d3   : > { %v2372_v36 = vadd.f32 %v4408_v62, %v2371_v23 }
 0x4d4   : > { %v2531_v38 = vmax.f32 %v2377_v51, 0.0 }
 0x4d5   : > { %v2530_v42 = vmax.f32 %v2372_v36, 0.0  ;;  %v3302_v50 = vpop.f32.mrb[34].mxu1 }
 0x4d6   : > { %v2387_v32 = vadd.f32 %v3302_v50, %v4408_v62  ;;  %v2381_v25 = vpop.f32.mrb[35].mxu1  ;;  %v2570_v21 = vmul.f32 %v4415_v24, %v2531_v38 }
 0x4d7   : > { %v2382_v54 = vadd.f32 %v4408_v62, %v2381_v25  ;;  %v2569_v49 = vmul.f32 %v4415_v24, %v2530_v42 }
 0x4d8   : > { %v2533_v9 = vmax.f32 %v2387_v32, 0.0  ;;  %v2605_v27 = vsel %vm2601_vm3, %v2570_v21, 0.0 }
 0x4d9   : > { %v2532_v45 = vmax.f32 %v2382_v54, 0.0  ;;  %2606 = vadd.xlane.f32.xlu1 %v2605_v27  ;;  %v3305_v48 = vpop.f32.mrb[36].mxu1  ;;  %v2602_v0 = vsel %vm2601_vm3, %v2569_v49, 0.0 }
 0x4da   : > { %v2572_v46 = vmul.f32 %v4415_v24, %v2533_v9  ;;  %v2397_v63 = vadd.f32 %v3305_v48, %v4408_v62  ;;  %v2391_v16 = vpop.f32.mrb[37].mxu1  ;;  %2603 = vadd.xlane.f32.xlu0 %v2602_v0 }
 0x4db   : > { %v2392_v57 = vadd.f32 %v4408_v62, %v2391_v16  ;;  %v2571_v11 = vmul.f32 %v4415_v24, %v2532_v45 }
 0x4dc   : > { %v2611_v31 = vsel %vm2601_vm3, %v2572_v46, 0.0  ;;  %v2535_v14 = vmax.f32 %v2397_v63, 0.0 }
 0x4dd   : > { %v2534_v3 = vmax.f32 %v2392_v57, 0.0  ;;  %v3308_v19 = vpop.f32.mrb[38].mxu1  ;;  %v2608_v6 = vsel %vm2601_vm3, %v2571_v11, 0.0 }
 0x4de   : > { %v2407_v29 = vadd.f32 %v3308_v19, %v4408_v62  ;;  %v2401_v61 = vpop.f32.mrb[39].mxu1  ;;  %2612 = vadd.xlane.f32.xlu0 %v2611_v31  ;;  %v2574_v7 = vmul.f32 %v4415_v24, %v2535_v14 }
 0x4df   : > { %v2573_v4 = vmul.f32 %v4415_v24, %v2534_v3  ;;  %v2402_v56 = vadd.f32 %v4408_v62, %v2401_v61 }
 0x4e0   : > { %v2537_v17 = vmax.f32 %v2407_v29, 0.0  ;;  %v2617_v18 = vsel %vm2601_vm3, %v2574_v7, 0.0 }
 0x4e1   : > { %v2536_v41 = vmax.f32 %v2402_v56, 0.0  ;;  %v3311_v39 = vpop.f32.mrb[40].mxu1  ;;  %v2614_v53 = vsel %vm2601_vm3, %v2573_v4, 0.0 }
 0x4e2   : > { %v2417_v1 = vadd.f32 %v3311_v39, %v4408_v62  ;;  %v2411_v20 = vpop.f32.mrb[41].mxu1  ;;  %2615 = vadd.xlane.f32.xlu1 %v2614_v53  ;;  %2609 = vadd.xlane.f32.xlu0 %v2608_v6  ;;  %v2576_v44 = vmul.f32 %v4415_v24, %v2537_v17 }
 0x4e3   : > { %v2575_v13 = vmul.f32 %v4415_v24, %v2536_v41  ;;  %v2412_v47 = vadd.f32 %v4408_v62, %v2411_v20 }
 0x4e4   : > { %v2539_v10 = vmax.f32 %v2417_v1, 0.0  ;;  %v2623_v33 = vsel %vm2601_vm3, %v2576_v44, 0.0 }
 0x4e5   : > { %v2538_v28 = vmax.f32 %v2412_v47, 0.0  ;;  %v3314_v60 = vpop.f32.mrb[42].mxu1  ;;  %v2620_v30 = vsel %vm2601_vm3, %v2575_v13, 0.0 }
 0x4e6   : > { %v2427_v55 = vadd.f32 %v3314_v60, %v4408_v62  ;;  %v2421_v2 = vpop.f32.mrb[43].mxu1  ;;  %2621 = vadd.xlane.f32.xlu1 %v2620_v30  ;;  %2618 = vadd.xlane.f32.xlu0 %v2617_v18  ;;  %v2578_v15 = vmul.f32 %v4415_v24, %v2539_v10 }
 0x4e7   : > { %v2577_v58 = vmul.f32 %v4415_v24, %v2538_v28  ;;  %v2422_v5 = vadd.f32 %v4408_v62, %v2421_v2 }
 0x4e8   : > { %v2541_v22 = vmax.f32 %v2427_v55, 0.0  ;;  %v2629_v36 = vsel %vm2601_vm3, %v2578_v15, 0.0 }
 0x4e9   : > { %v2540_v37 = vmax.f32 %v2422_v5, 0.0  ;;  %v3317_v12 = vpop.f32.mrb[44].mxu1  ;;  %v2626_v52 = vsel %vm2601_vm3, %v2577_v58, 0.0 }
 0x4ea   : > { %v2437_v26 = vadd.f32 %v3317_v12, %v4408_v62  ;;  %v2431_v43 = vpop.f32.mrb[45].mxu1  ;;  %2627 = vadd.xlane.f32.xlu1 %v2626_v52  ;;  %2624 = vadd.xlane.f32.xlu0 %v2623_v33  ;;  %v2580_v59 = vmul.f32 %v4415_v24, %v2541_v22 }
 0x4eb   : > { %v2579_v35 = vmul.f32 %v4415_v24, %v2540_v37  ;;  %v2432_v40 = vadd.f32 %v4408_v62, %v2431_v43 }
 0x4ec   : > { %v2543_v8 = vmax.f32 %v2437_v26, 0.0  ;;  %v2635_v27 = vsel %vm2601_vm3, %v2580_v59, 0.0 }
 0x4ed   : > { %v2542_v34 = vmax.f32 %v2432_v40, 0.0  ;;  %v3320_v51 = vpop.f32.mrb[46].mxu1  ;;  %v2632_v23 = vsel %vm2601_vm3, %v2579_v35, 0.0 }
 0x4ee   : > { %v2447_v38 = vadd.f32 %v3320_v51, %v4408_v62  ;;  %v2441_v42 = vpop.f32.mrb[47].mxu1  ;;  %2633 = vadd.xlane.f32.xlu1 %v2632_v23  ;;  %2630 = vadd.xlane.f32.xlu0 %v2629_v36  ;;  %v2582_v25 = vmul.f32 %v4415_v24, %v2543_v8 }
 0x4ef   : > { %v2581_v50 = vmul.f32 %v4415_v24, %v2542_v34  ;;  %v2442_v32 = vadd.f32 %v4408_v62, %v2441_v42 }
 0x4f0   : > { %v2545_v21 = vmax.f32 %v2447_v38, 0.0  ;;  %v2641_v63 = vsel %vm2601_vm3, %v2582_v25, 0.0 }
 0x4f1   : > { %v2544_v54 = vmax.f32 %v2442_v32, 0.0  ;;  %v3323_v49 = vpop.f32.mrb[48].mxu1  ;;  %v2638_v9 = vsel %vm2601_vm3, %v2581_v50, 0.0 }
 0x4f2   : > { %v2457_v45 = vadd.f32 %v3323_v49, %v4408_v62  ;;  %v2451_v48 = vpop.f32.mrb[49].mxu1  ;;  %2639 = vadd.xlane.f32.xlu1 %v2638_v9  ;;  %2636 = vadd.xlane.f32.xlu0 %v2635_v27  ;;  %v2584_v16 = vmul.f32 %v4415_v24, %v2545_v21 }
 0x4f3   : > { %v2583_v0 = vmul.f32 %v4415_v24, %v2544_v54  ;;  %v2452_v46 = vadd.f32 %v4408_v62, %v2451_v48 }
 0x4f4   : > { %v2547_v57 = vmax.f32 %v2457_v45, 0.0  ;;  %v2647_v39 = vsel %vm2601_vm3, %v2584_v16, 0.0 }
 0x4f5   : > { %v2546_v31 = vmax.f32 %v2452_v46, 0.0  ;;  %v3326_v11 = vpop.f32.mrb[50].mxu1  ;;  %v2644_v14 = vsel %vm2601_vm3, %v2583_v0, 0.0 }
 0x4f6   : > { %v2467_v3 = vadd.f32 %v3326_v11, %v4408_v62  ;;  %v2461_v19 = vpop.f32.mrb[51].mxu1  ;;  %2645 = vadd.xlane.f32.xlu1 %v2644_v14  ;;  %2642 = vadd.xlane.f32.xlu0 %v2641_v63  ;;  %v2586_v56 = vmul.f32 %v4415_v24, %v2547_v57 }
 0x4f7   : > { %v2585_v29 = vmul.f32 %v4415_v24, %v2546_v31  ;;  %v2462_v61 = vadd.f32 %v4408_v62, %v2461_v19 }
 0x4f8   : > { %v2549_v4 = vmax.f32 %v2467_v3, 0.0  ;;  %v2653_v60 = vsel %vm2601_vm3, %v2586_v56, 0.0 }
 0x4f9   : > { %v2548_v17 = vmax.f32 %v2462_v61, 0.0  ;;  %v3329_v7 = vpop.f32.mrb[52].mxu1  ;;  %v2650_v41 = vsel %vm2601_vm3, %v2585_v29, 0.0 }
 0x4fa   : > { %v2477_v53 = vadd.f32 %v3329_v7, %v4408_v62  ;;  %v2471_v6 = vpop.f32.mrb[53].mxu1  ;;  %2651 = vadd.xlane.f32.xlu1 %v2650_v41  ;;  %2648 = vadd.xlane.f32.xlu0 %v2647_v39  ;;  %v2588_v13 = vmul.f32 %v4415_v24, %v2549_v4 }
 0x4fb   : > { %v2587_v1 = vmul.f32 %v4415_v24, %v2548_v17  ;;  %v2472_v20 = vadd.f32 %v4408_v62, %v2471_v6  ;;  %v4511_v6 = vld [vmem:[#allocation2] ss:$0 sm:$0xff] }
 0x4fc   : > { %v2551_v47 = vmax.f32 %v2477_v53, 0.0  ;;  %v2659_v58 = vsel %vm2601_vm3, %v2588_v13, 0.0 }
 0x4fd   : > { %v2550_v44 = vmax.f32 %v2472_v20, 0.0  ;;  %v3332_v10 = vpop.f32.mrb[54].mxu1  ;;  %v2656_v28 = vsel %vm2601_vm3, %v2587_v1, 0.0 }
 0x4fe   : > { %v2487_v30 = vadd.f32 %v3332_v10, %v4408_v62  ;;  %v2481_v18 = vpop.f32.mrb[55].mxu1  ;;  %2657 = vadd.xlane.f32.xlu1 %v2656_v28  ;;  %2654 = vadd.xlane.f32.xlu0 %v2653_v60  ;;  %v2590_v5 = vmul.f32 %v4415_v24, %v2551_v47 }
 0x4ff   : > { %v2589_v55 = vmul.f32 %v4415_v24, %v2550_v44  ;;  %v2482_v2 = vadd.f32 %v4408_v62, %v2481_v18 }
 0x500   : > { %v2553_v33 = vmax.f32 %v2487_v30, 0.0  ;;  %v2665_v51 = vsel %vm2601_vm3, %v2590_v5, 0.0 }
 0x501   : > { %v2552_v15 = vmax.f32 %v2482_v2, 0.0  ;;  %v3335_v22 = vpop.f32.mrb[56].mxu1  ;;  %v2662_v37 = vsel %vm2601_vm3, %v2589_v55, 0.0 }
 0x502   : > { %v2497_v12 = vadd.f32 %v3335_v22, %v4408_v62  ;;  %v2491_v52 = vpop.f32.mrb[57].mxu1  ;;  %2663 = vadd.xlane.f32.xlu1 %v2662_v37  ;;  %2660 = vadd.xlane.f32.xlu0 %v2659_v58  ;;  %v2592_v40 = vmul.f32 %v4415_v24, %v2553_v33 }
 0x503   : > { %v2591_v26 = vmul.f32 %v4415_v24, %v2552_v15  ;;  %v2492_v43 = vadd.f32 %v4408_v62, %v2491_v52 }
 0x504   : > { %v2555_v35 = vmax.f32 %v2497_v12, 0.0  ;;  %v2671_v49 = vsel %vm2601_vm3, %v2592_v40, 0.0 }
 0x505   : > { %v2554_v8 = vmax.f32 %v2492_v43, 0.0  ;;  %v3338_v59 = vpop.f32.mrb[58].mxu1  ;;  %v2668_v34 = vsel %vm2601_vm3, %v2591_v26, 0.0 }
 0x506   : > { %v2507_v23 = vadd.f32 %v3338_v59, %v4408_v62  ;;  %v2501_v36 = vpop.f32.mrb[59].mxu1  ;;  %2669 = vadd.xlane.f32.xlu1 %v2668_v34  ;;  %2666 = vadd.xlane.f32.xlu0 %v2665_v51  ;;  %v2594_v50 = vmul.f32 %v4415_v24, %v2555_v35 }
 0x507   : > { %v2593_v38 = vmul.f32 %v4415_v24, %v2554_v8  ;;  %v2502_v42 = vadd.f32 %v4408_v62, %v2501_v36 }
 0x508   : > { %v2557_v32 = vmax.f32 %v2507_v23, 0.0  ;;  %v2677_v0 = vsel %vm2601_vm3, %v2594_v50, 0.0 }
 0x509   : > { %v2556_v25 = vmax.f32 %v2502_v42, 0.0  ;;  %v3341_v21 = vpop.f32.mrb[60].mxu1  ;;  %v2674_v54 = vsel %vm2601_vm3, %v2593_v38, 0.0 }
 0x50a   : > { %v2517_v9 = vadd.f32 %v3341_v21, %v4408_v62  ;;  %v2511_v27 = vpop.f32.mrb[61].mxu1  ;;  %2675 = vadd.xlane.f32.xlu1 %v2674_v54  ;;  %2672 = vadd.xlane.f32.xlu0 %v2671_v49  ;;  %v2596_v46 = vmul.f32 %v4415_v24, %v2557_v32 }
 0x50b   : > { %v2595_v45 = vmul.f32 %v4415_v24, %v2556_v25  ;;  %v2512_v48 = vadd.f32 %v4408_v62, %v2511_v27 }
 0x50c   : > { %v2559_v63 = vmax.f32 %v2517_v9, 0.0  ;;  %v2683_v17 = vsel %vm2601_vm3, %v2596_v46, 0.0 }
 0x50d   : > { %v2558_v16 = vmax.f32 %v2512_v48, 0.0  ;;  %v3344_v57 = vpop.f32.mrb[62].mxu1  ;;  %v2680_v31 = vsel %vm2601_vm3, %v2595_v45, 0.0 }
 0x50e   : > { %v2527_v11 = vadd.f32 %v3344_v57, %v4408_v62  ;;  %v2521_v14 = vpop.f32.mrb[63].mxu1  ;;  %2681 = vadd.xlane.f32.xlu1 %v2680_v31  ;;  %2678 = vadd.xlane.f32.xlu0 %v2677_v0  ;;  %v2598_v61 = vmul.f32 %v4415_v24, %v2559_v63 }
 0x50f   : > { %v2597_v3 = vmul.f32 %v4415_v24, %v2558_v16  ;;  %v2522_v19 = vadd.f32 %v4408_v62, %v2521_v14 }
 0x510   : > { %v2561_v29 = vmax.f32 %v2527_v11, 0.0  ;;  %v2689_v62 = vsel %vm2601_vm3, %v2598_v61, 0.0 }
 0x511   : > { %v2560_v4 = vmax.f32 %v2522_v19, 0.0  ;;  %v2686_v56 = vsel %vm2601_vm3, %v2597_v3, 0.0 }
 0x512   : > { %v2600_v7 = vmul.f32 %v4415_v24, %v2561_v29  ;;  %2687 = vadd.xlane.f32.xlu1 %v2686_v56  ;;  %2684 = vadd.xlane.f32.xlu0 %v2683_v17 }
 0x513   : > { %v2599_v41 = vmul.f32 %v4415_v24, %v2560_v4 }
 0x514   : > { %v2695_v39 = vsel %vm2601_vm3, %v2600_v7, 0.0 }
 0x515   : > { %v2692_v53 = vsel %vm2601_vm3, %v2599_v41, 0.0 }
 0x516   : > { %2693 = vadd.xlane.f32.xlu1 %v2692_v53  ;;  %2690 = vadd.xlane.f32.xlu0 %v2689_v62 }
 0x51a   : > { %2696 = vadd.xlane.f32.xlu0 %v2695_v39 }
 0x566   : > { %v2607_v24 = vpop.xlane.xlu1 %2606 }
 0x567   : > { %v2706_v1 = vadd.f32 %v4511_v6, %v2607_v24  ;;  %v2604_v20 = vpop.xlane.xlu0 %2603 }
 0x568   : > { %v2705_v13 = vadd.f32 %v4511_v6, %v2604_v20 }
 0x569   : > { %2739 = vst.msk [vmem:[%s4518_s21 + $0x8] sm:$0xff] %vm2737_vm4, %v2706_v1 }
 0x56a   : > { %2738 = vst.msk [vmem:[%s4518_s21] sm:$0xff] %vm2737_vm4, %v2705_v13 }
 0x56b   : > { %v2613_v47 = vpop.xlane.xlu0 %2612 }
 0x56c   : > { %v2708_v44 = vadd.f32 %v4511_v6, %v2613_v47 }
 0x56e   : > { %2741 = vst.msk [vmem:[%s4518_s21 + $0x18] sm:$0xff] %vm2737_vm4, %v2708_v44 }
 0x56f   : > { %v2616_v10 = vpop.xlane.xlu1 %2615  ;;  %v2610_v28 = vpop.xlane.xlu0 %2609 }
 0x570   : > { %v2709_v60 = vadd.f32 %v4511_v6, %v2616_v10  ;;  %v2707_v30 = vadd.f32 %v4511_v6, %v2610_v28 }
 0x572   : > { %2742 = vst.msk [vmem:[%s4518_s21 + $0x20] sm:$0xff] %vm2737_vm4, %v2709_v60  ;;  %2740 = vst.msk [vmem:[%s4518_s21 + $0x10] sm:$0xff] %vm2737_vm4, %v2707_v30 }
 0x573   : > { %v2622_v18 = vpop.xlane.xlu1 %2621  ;;  %v2619_v55 = vpop.xlane.xlu0 %2618 }
 0x574   : > { %v2711_v2 = vadd.f32 %v4511_v6, %v2622_v18  ;;  %v2710_v58 = vadd.f32 %v4511_v6, %v2619_v55 }
 0x576   : > { %2744 = vst.msk [vmem:[%s4518_s21 + $0x30] sm:$0xff] %vm2737_vm4, %v2711_v2  ;;  %2743 = vst.msk [vmem:[%s4518_s21 + $0x28] sm:$0xff] %vm2737_vm4, %v2710_v58 }
 0x577   : > { %v2628_v5 = vpop.xlane.xlu1 %2627  ;;  %v2625_v33 = vpop.xlane.xlu0 %2624 }
 0x578   : > { %v2713_v15 = vadd.f32 %v4511_v6, %v2628_v5  ;;  %v2712_v22 = vadd.f32 %v4511_v6, %v2625_v33 }
 0x57a   : > { %2746 = vst.msk [vmem:[%s4518_s21 + $0x40] sm:$0xff] %vm2737_vm4, %v2713_v15  ;;  %2745 = vst.msk [vmem:[%s4518_s21 + $0x38] sm:$0xff] %vm2737_vm4, %v2712_v22 }
 0x57b   : > { %v2634_v37 = vpop.xlane.xlu1 %2633  ;;  %v2631_v12 = vpop.xlane.xlu0 %2630 }
 0x57c   : > { %v2715_v52 = vadd.f32 %v4511_v6, %v2634_v37  ;;  %v2714_v26 = vadd.f32 %v4511_v6, %v2631_v12 }
 0x57e   : > { %2748 = vst.msk [vmem:[%s4518_s21 + $0x50] sm:$0xff] %vm2737_vm4, %v2715_v52  ;;  %2747 = vst.msk [vmem:[%s4518_s21 + $0x48] sm:$0xff] %vm2737_vm4, %v2714_v26 }
 0x57f   : > { %v2640_v43 = vpop.xlane.xlu1 %2639  ;;  %v2637_v35 = vpop.xlane.xlu0 %2636 }
 0x580   : > { %v2717_v40 = vadd.f32 %v4511_v6, %v2640_v43  ;;  %v2716_v8 = vadd.f32 %v4511_v6, %v2637_v35 }
 0x582   : > { %2750 = vst.msk [vmem:[%s4518_s21 + $0x60] sm:$0xff] %vm2737_vm4, %v2717_v40  ;;  %2749 = vst.msk [vmem:[%s4518_s21 + $0x58] sm:$0xff] %vm2737_vm4, %v2716_v8 }
 0x583   : > { %v2646_v59 = vpop.xlane.xlu1 %2645  ;;  %v2643_v34 = vpop.xlane.xlu0 %2642 }
 0x584   : > { %v2719_v51 = vadd.f32 %v4511_v6, %v2646_v59  ;;  %v2718_v23 = vadd.f32 %v4511_v6, %v2643_v34 }
 0x586   : > { %2752 = vst.msk [vmem:[%s4518_s21 + $0x70] sm:$0xff] %vm2737_vm4, %v2719_v51  ;;  %2751 = vst.msk [vmem:[%s4518_s21 + $0x68] sm:$0xff] %vm2737_vm4, %v2718_v23 }
 0x587   : > { %v2652_v36 = vpop.xlane.xlu1 %2651  ;;  %v2649_v38 = vpop.xlane.xlu0 %2648 }
 0x588   : > { %v2721_v42 = vadd.f32 %v4511_v6, %v2652_v36  ;;  %v2720_v50 = vadd.f32 %v4511_v6, %v2649_v38 }
 0x58a   : > { %2754 = vst.msk [vmem:[%s4518_s21 + $0x80] sm:$0xff] %vm2737_vm4, %v2721_v42  ;;  %2753 = vst.msk [vmem:[%s4518_s21 + $0x78] sm:$0xff] %vm2737_vm4, %v2720_v50 }
 0x58b   : > { %v2658_v32 = vpop.xlane.xlu1 %2657  ;;  %v2655_v25 = vpop.xlane.xlu0 %2654 }
 0x58c   : > { %v2723_v21 = vadd.f32 %v4511_v6, %v2658_v32  ;;  %v2722_v54 = vadd.f32 %v4511_v6, %v2655_v25 }
 0x58e   : > { %2756 = vst.msk [vmem:[%s4518_s21 + $0x90] sm:$0xff] %vm2737_vm4, %v2723_v21  ;;  %2755 = vst.msk [vmem:[%s4518_s21 + $0x88] sm:$0xff] %vm2737_vm4, %v2722_v54 }
 0x58f   : > { %v2664_v49 = vpop.xlane.xlu1 %2663  ;;  %v2661_v9 = vpop.xlane.xlu0 %2660 }
 0x590   : > { %v2725_v27 = vadd.f32 %v4511_v6, %v2664_v49  ;;  %v2724_v45 = vadd.f32 %v4511_v6, %v2661_v9 }
 0x592   : > { %2758 = vst.msk [vmem:[%s4518_s21 + $0xa0] sm:$0xff] %vm2737_vm4, %v2725_v27  ;;  %2757 = vst.msk [vmem:[%s4518_s21 + $0x98] sm:$0xff] %vm2737_vm4, %v2724_v45 }
 0x593   : > { %v2670_v48 = vpop.xlane.xlu1 %2669  ;;  %v2667_v0 = vpop.xlane.xlu0 %2666 }
 0x594   : > { %v2727_v46 = vadd.f32 %v4511_v6, %v2670_v48  ;;  %v2726_v63 = vadd.f32 %v4511_v6, %v2667_v0 }
 0x596   : > { %2760 = vst.msk [vmem:[%s4518_s21 + $0xb0] sm:$0xff] %vm2737_vm4, %v2727_v46  ;;  %2759 = vst.msk [vmem:[%s4518_s21 + $0xa8] sm:$0xff] %vm2737_vm4, %v2726_v63 }
 0x597   : > { %v2676_v16 = vpop.xlane.xlu1 %2675  ;;  %v2673_v57 = vpop.xlane.xlu0 %2672 }
 0x598   : > { %v2729_v31 = vadd.f32 %v4511_v6, %v2676_v16  ;;  %v2728_v11 = vadd.f32 %v4511_v6, %v2673_v57 }
 0x59a   : > { %2762 = vst.msk [vmem:[%s4518_s21 + $0xc0] sm:$0xff] %vm2737_vm4, %v2729_v31  ;;  %2761 = vst.msk [vmem:[%s4518_s21 + $0xb8] sm:$0xff] %vm2737_vm4, %v2728_v11 }
 0x59b   : > { %v2682_v14 = vpop.xlane.xlu1 %2681  ;;  %v2679_v3 = vpop.xlane.xlu0 %2678 }
 0x59c   : > { %v2731_v19 = vadd.f32 %v4511_v6, %v2682_v14  ;;  %v2730_v29 = vadd.f32 %v4511_v6, %v2679_v3 }
 0x59e   : > { %2764 = vst.msk [vmem:[%s4518_s21 + $0xd0] sm:$0xff] %vm2737_vm4, %v2731_v19  ;;  %2763 = vst.msk [vmem:[%s4518_s21 + $0xc8] sm:$0xff] %vm2737_vm4, %v2730_v29 }
 0x59f   : > { %v2688_v61 = vpop.xlane.xlu1 %2687  ;;  %v2685_v4 = vpop.xlane.xlu0 %2684 }
 0x5a0   : > { %v2733_v56 = vadd.f32 %v4511_v6, %v2688_v61  ;;  %v2732_v17 = vadd.f32 %v4511_v6, %v2685_v4 }
 0x5a2   : > { %2766 = vst.msk [vmem:[%s4518_s21 + $0xe0] sm:$0xff] %vm2737_vm4, %v2733_v56  ;;  %2765 = vst.msk [vmem:[%s4518_s21 + $0xd8] sm:$0xff] %vm2737_vm4, %v2732_v17 }
 0x5a3   : > { %v2694_v7 = vpop.xlane.xlu1 %2693  ;;  %v2691_v41 = vpop.xlane.xlu0 %2690 }
 0x5a4   : > { %v2735_v39 = vadd.f32 %v4511_v6, %v2694_v7  ;;  %v2734_v53 = vadd.f32 %v4511_v6, %v2691_v41 }
 0x5a6   : > { %2768 = vst.msk [vmem:[%s4518_s21 + $0xf0] sm:$0xff] %vm2737_vm4, %v2735_v39  ;;  %2767 = vst.msk [vmem:[%s4518_s21 + $0xe8] sm:$0xff] %vm2737_vm4, %v2734_v53 }
 0x5a7   : > { %v2697_v62 = vpop.xlane.xlu0 %2696 }
 0x5a8   : > { %v2736_v24 = vadd.f32 %v4511_v6, %v2697_v62 }
 0x5aa   : > { %2769 = vst.msk [vmem:[%s4518_s21 + $0xf8] sm:$0xff] %vm2737_vm4, %v2736_v24 }
 0x5ab PF: > { %s26_s15 = sadd.s32 1, %s3393_s15  }
 0x5ac   : > { %p23_p4 = scmp.ge.s32.totalorder %s26_s15, 4  }
 0x5ae   :  { %25 = sbr.rel (!%p23_p4) target bundleno = 3 (0x3), region = 106 }

</bundles_post_ra>
